<compile_context>
chip_gen: v7x
topology: tpu7x:2x2x1
jax: 0.10.0
libtpu: 0.0.40
codegen_flags: <defaults>
</compile_context>

<pallas_src>
import functools
import numpy as np
import jax
import jax.numpy as jnp
from jax.experimental import pallas as pl
from jax.experimental.pallas import tpu as pltpu  # noqa: F401  (kept for TPU backend parity)

X_SIZE = 8          # node feature size
H_SIZE = 32         # hidden size
OUT_SIZE = 16       # output size of fc_output
MAX_NODE = 8        # max nodes per graph
N_PAD = 16          # padded total node count (real n = 11)
E_PAD = 16          # padded total edge count (real E = 10)


def _sigmoid(x):
  return 1.0 / (1.0 + jnp.exp(-x))


# ----------------------------------------------------------------------------
# Fused Pallas kernel: forward round + backward round + per-graph packing + fc.
# No grid; directions & order levels are statically unrolled.
# ----------------------------------------------------------------------------
def fused_graph_lstm_kernel(x_ref, w_init_ref, b_all_ref, u_full_ref, lab_ref,
                            gsrc_ref, sdst_ref, nmask_ref,
                            pack_ref, w_out_ref, b_out_ref, out_ref,
                            *, num_levels, has_edges):
  hs = H_SIZE
  x = x_ref[...]                         # (N, X)
  w_init_all = w_init_ref[...]           # (2, X, 4h)   [W_iou | W_f]^T
  b_all_all = b_all_ref[...]             # (2, 1, 4h)   [b_iou | b_f]
  u_full_all = u_full_ref[...]           # (2, 2h, 4h)  [U_iou | U_f]^T
  lab_all = lab_ref[...]                 # (2, E, 1)
  gsrc_all = gsrc_ref[...]               # (2, E, N)    one-hot gather by edge_index[1]
  sdst_all = sdst_ref[...]               # (2L, N, E)   per-level edge-masked scatter
  nmask_all = nmask_ref[...]             # (2L, N, 1)   per-level node masks

  def run_direction(d):
    # init projection with biases folded in: [iou_x + b_iou | wf_x + b_f]
    init = jnp.dot(x, w_init_all[d], preferred_element_type=jnp.float32) + b_all_all[d]
    acc = init[:, :3 * hs]               # iou_x + b_iou, accumulates iou_mid across levels
    wfx = init[:, 3 * hs:]               # wf_x + b_f
    h = jnp.zeros((N_PAD, hs), jnp.float32)
    c = jnp.zeros((N_PAD, hs), jnp.float32)
    lab = lab_all[d]                     # (E, 1)
    gsrc = gsrc_all[d]                   # (E, N)

    for lvl in range(num_levels):
      if has_edges[d][lvl]:
        # ---- message passing (fused gather / U / scatter matmuls) ----
        state = jnp.concatenate([h, c, wfx], axis=1)                    # (N, 3h)
        gath = jnp.dot(gsrc, state, preferred_element_type=jnp.float32)  # (E, 3h)
        h_j = gath[:, :hs]
        c_j = gath[:, hs:2 * hs]
        wfxj = gath[:, 2 * hs:]
        h_two = jnp.concatenate([(1.0 - lab) * h_j, lab * h_j], axis=1)  # (E, 2h)
        u_out = jnp.dot(h_two, u_full_all[d],
                        preferred_element_type=jnp.float32)             # (E, 4h)
        f = _sigmoid(wfxj + u_out[:, 3 * hs:])
        c_j_cl = jnp.clip(c_j, -1e14, 1e14)
        payload = jnp.concatenate([u_out[:, :3 * hs], f * c_j_cl], axis=1)  # (E, 4h)
        delta = jnp.dot(sdst_all[d * num_levels + lvl], payload,
                        preferred_element_type=jnp.float32)             # (N, 4h)
        acc = acc + delta[:, :3 * hs]
        c = c + delta[:, 3 * hs:]

      # ---- node update for this level's nodes ----
      nmask = nmask_all[d * num_levels + lvl]                           # (N, 1)
      i_g = _sigmoid(acc[:, :hs])
      o_g = _sigmoid(acc[:, hs:2 * hs])
      u_g = jnp.tanh(acc[:, 2 * hs:3 * hs])
      c_temp = i_g * u_g + c
      c = nmask * c_temp + (1.0 - nmask) * c
      h = nmask * (o_g * jnp.tanh(c_temp)) + (1.0 - nmask) * h
    return h

  # ---- concat directions, pack per graph, fc_output ----
  hcat = jnp.concatenate([run_direction(0), run_direction(1)], axis=1)  # (N, 2h)
  packed = jnp.dot(pack_ref[...], hcat, preferred_element_type=jnp.float32)  # (G*MAX, 2h)
  out_ref[...] = (jnp.dot(packed, w_out_ref[...],
                          preferred_element_type=jnp.float32) + b_out_ref[...])


def graph_lstm_pallas(x_pad, stacked, w_out_t, b_out, *, num_levels, has_edges,
                      num_graphs):
  kernel = functools.partial(fused_graph_lstm_kernel,
                             num_levels=num_levels, has_edges=has_edges)
  return pl.pallas_call(
      kernel,
      out_shape=jax.ShapeDtypeStruct((num_graphs * MAX_NODE, OUT_SIZE), jnp.float32),
  )(x_pad, stacked["w_init"], stacked["b_all"], stacked["u_full"],
    stacked["lab"], stacked["gsrc"], stacked["sdst"], stacked["nmask"],
    stacked["pack"], w_out_t, b_out)


# ----------------------------------------------------------------------------
# Parameter init (deterministic, shapes from SingleRoundGraphLSTM_pyg.__init__)
# ----------------------------------------------------------------------------
def init_round_params(key):
  k1, k2, k3, k4 = jax.random.split(key, 4)

  def lin(k, fan_in, fan_out):
    bound = 1.0 / np.sqrt(fan_in)
    return jax.random.uniform(k, (fan_in, fan_out), jnp.float32, -bound, bound)

  w_iou_t = lin(k1, X_SIZE, 3 * H_SIZE)
  w_f_t = lin(k2, X_SIZE, H_SIZE)
  u_iou_t = lin(k3, 2 * H_SIZE, 3 * H_SIZE)
  u_f_t = lin(k4, 2 * H_SIZE, H_SIZE)
  return {
      "w_iou_t": w_iou_t, "w_f_t": w_f_t,
      "u_iou_t": u_iou_t, "u_f_t": u_f_t,
      "b_iou": jnp.zeros((1, 3 * H_SIZE), jnp.float32),   # nn.Parameter(zeros)
      "b_f": jnp.zeros((1, H_SIZE), jnp.float32),
  }


def pack_round_params(p):
  """Lane-pack weights: [W_iou|W_f] -> (X,4h), [b_iou|b_f] -> (1,4h), [U_iou|U_f] -> (2h,4h)."""
  w_init = np.concatenate([np.asarray(p["w_iou_t"]), np.asarray(p["w_f_t"])], axis=1)
  b_all = np.concatenate([np.asarray(p["b_iou"]), np.asarray(p["b_f"])], axis=1)
  u_full = np.concatenate([np.asarray(p["u_iou_t"]), np.asarray(p["u_f_t"])], axis=1)
  return w_init, b_all, u_full


# ----------------------------------------------------------------------------
# Dense graph packing (host glue, done once)
# ----------------------------------------------------------------------------
def build_direction(edges, order_nodes, order_edges, edge_labels):
  L = len(order_nodes)
  gsrc = np.zeros((E_PAD, N_PAD), np.float32)
  lab = np.zeros((E_PAD, 1), np.float32)
  for e, (dst, src) in enumerate(edges):
    gsrc[e, src] = 1.0
    lab[e, 0] = edge_labels[e]
  sdst = np.zeros((L, N_PAD, E_PAD), np.float32)   # edge mask folded per level
  nmask = np.zeros((L, N_PAD, 1), np.float32)
  has_edges = []
  for lvl in range(L):
    for nd in order_nodes[lvl]:
      nmask[lvl, nd, 0] = 1.0
    for e in order_edges[lvl]:
      sdst[lvl, edges[e][0], e] = 1.0
    has_edges.append(len(order_edges[lvl]) > 0)
  return gsrc, lab, sdst, nmask, tuple(has_edges)


def build_pack(len_input):
  """One-hot (G*MAX_NODE, N_PAD) matrix realising the per-graph h packing."""
  P = np.zeros((len(len_input) * MAX_NODE, N_PAD), np.float32)
  acc = 0
  for g, n in enumerate(len_input):
    for i in range(n):
      P[g * MAX_NODE + i, acc + i] = 1.0
    acc += n
  return P


def pad_to_graphs(h, len_input):
  G = len(len_input)
  out = np.zeros((G, MAX_NODE, h.shape[1]), np.float32)
  acc = 0
  for g in range(G):
    out[g, :len_input[g]] = h[acc:acc + len_input[g]]
    acc += len_input[g]
  return out


# ----------------------------------------------------------------------------
# Pure numpy reference following the PyTorch semantics exactly
# ----------------------------------------------------------------------------
def np_sigmoid(x):
  return 1.0 / (1.0 + np.exp(-x))


def single_round_ref(params, x, edges, edge_labels, order_nodes, order_edges):
  n = x.shape[0]
  W_iouT = np.asarray(params["w_iou_t"]); W_fT = np.asarray(params["w_f_t"])
  U_iouT = np.asarray(params["u_iou_t"]); U_fT = np.asarray(params["u_f_t"])
  b_iou = np.asarray(params["b_iou"]); b_f = np.asarray(params["b_f"])
  h = np.zeros((n, H_SIZE), np.float32)
  c = np.zeros((n, H_SIZE), np.float32)
  iou_x = x @ W_iouT
  wf_x = x @ W_fT
  iou_mid = np.zeros((n, 3 * H_SIZE), np.float32)
  edge_dst = np.array([d for d, s in edges])
  edge_src = np.array([s for d, s in edges])
  lab = np.array(edge_labels, np.float32).reshape(-1, 1)

  def update(idx):
    nonlocal h, c
    iou = iou_x[idx] + iou_mid[idx] + b_iou
    i, o, u = np.split(iou, 3, axis=1)
    i, o, u = np_sigmoid(i), np_sigmoid(o), np.tanh(u)
    c_temp = i * u + c[idx]
    c[idx] = c_temp
    h[idx] = o * np.tanh(c_temp)

  update(np.array(order_nodes[0]))
  for lvl in range(1, len(order_nodes)):
    eids = np.array(order_edges[lvl])
    src, dst = edge_src[eids], edge_dst[eids]
    h_j, c_j, wfj = h[src], c[src], wf_x[src]
    el = lab[eids]
    htt = np.concatenate([(1.0 - el) * h_j, el * h_j], axis=1)
    np.add.at(iou_mid, dst, htt @ U_iouT)
    f = np_sigmoid(wfj + htt @ U_fT + b_f)
    np.add.at(c, dst, f * np.clip(c_j, -1e14, 1e14))
    update(np.array(order_nodes[lvl]))
  return h


# ----------------------------------------------------------------------------
if __name__ == "__main__":
  key = jax.random.PRNGKey(0)
  kx, kf, kb, ko, kob, kl1, kl2 = jax.random.split(key, 7)

  # batch of 2 graphs: nodes 0..4 belong to graph 0, nodes 5..10 to graph 1
  len_input = [5, 6]
  n_real = sum(len_input)
  x_real = jax.random.normal(kx, (n_real, X_SIZE), jnp.float32)
  x_pad = jnp.zeros((N_PAD, X_SIZE), jnp.float32).at[:n_real].set(x_real)

  # forward graph: (dst <- src) edges, topological order levels
  g1_edges = [(2, 0), (2, 1), (3, 1), (7, 5), (8, 6),
              (4, 2), (4, 3), (9, 7), (9, 8), (10, 8)]
  g1_order_nodes = [[0, 1, 5, 6], [2, 3, 7, 8], [4, 9, 10]]
  g1_order_edges = [[], [0, 1, 2, 3, 4], [5, 6, 7, 8, 9]]
  # backward graph: reversed edges, reversed order
  g2_edges = [(s, d) for (d, s) in g1_edges]
  g2_order_nodes = [[4, 9, 10], [2, 3, 7, 8], [0, 1, 5, 6]]
  g2_order_edges = [[], [5, 6, 7, 8, 9], [0, 1, 2, 3, 4]]

  lab1 = np.asarray(jax.random.bernoulli(kl1, 0.5, (len(g1_edges),))).astype(np.float32)
  lab2 = np.asarray(jax.random.bernoulli(kl2, 0.5, (len(g2_edges),))).astype(np.float32)

  params_f = init_round_params(kf)
  params_b = init_round_params(kb)
  bound = 1.0 / np.sqrt(2 * H_SIZE)
  w_out_t = jax.random.uniform(ko, (2 * H_SIZE, OUT_SIZE), jnp.float32, -bound, bound)
  b_out = jax.random.uniform(kob, (1, OUT_SIZE), jnp.float32, -bound, bound)

  # ---- host-side packing (done once) ----
  gsrc1, labd1, sdst1, nmask1, he1 = build_direction(g1_edges, g1_order_nodes,
                                                     g1_order_edges, lab1)
  gsrc2, labd2, sdst2, nmask2, he2 = build_direction(g2_edges, g2_order_nodes,
                                                     g2_order_edges, lab2)
  L = len(g1_order_nodes)
  assert len(g2_order_nodes) == L

  wi1, ba1, uf1 = pack_round_params(params_f)
  wi2, ba2, uf2 = pack_round_params(params_b)

  stacked = {
      "w_init": jnp.asarray(np.stack([wi1, wi2])),              # (2, 8, 128)
      "b_all": jnp.asarray(np.stack([ba1, ba2])),               # (2, 1, 128)
      "u_full": jnp.asarray(np.stack([uf1, uf2])),              # (2, 64, 128)
      "lab": jnp.asarray(np.stack([labd1, labd2])),             # (2, 16, 1)
      "gsrc": jnp.asarray(np.stack([gsrc1, gsrc2])),            # (2, 16, 16)
      "sdst": jnp.asarray(np.concatenate([sdst1, sdst2], 0)),   # (2L, 16, 16)
      "nmask": jnp.asarray(np.concatenate([nmask1, nmask2], 0)),# (2L, 16, 1)
      "pack": jnp.asarray(build_pack(len_input)),               # (16, 16)
  }

  # --- Pallas path: single fused kernel launch ---
  out = graph_lstm_pallas(x_pad, stacked, w_out_t, b_out,
                          num_levels=L, has_edges=(he1, he2),
                          num_graphs=len(len_input))
  out = np.asarray(jax.block_until_ready(out)).reshape(len(len_input), MAX_NODE, OUT_SIZE)

  # --- reference path (PyTorch semantics) ---
  x_np = np.asarray(x_real)
  h1_ref = single_round_ref(params_f, x_np, g1_edges, lab1, g1_order_nodes, g1_order_edges)
  h2_ref = single_round_ref(params_b, x_np, g2_edges, lab2, g2_order_nodes, g2_order_edges)
  hcat_ref = np.concatenate([pad_to_graphs(h1_ref, len_input),
                             pad_to_graphs(h2_ref, len_input)], axis=2)
  out_ref = hcat_ref @ np.asarray(w_out_t) + np.asarray(b_out)

  assert out.shape == (2, MAX_NODE, OUT_SIZE)
  assert np.allclose(out, out_ref, atol=2e-3, rtol=2e-3), float(np.max(np.abs(out - out_ref)))
  print("KERNEL_OK")
</pallas_src>

<mosaic_0001>
module attributes {stable_mosaic.version = 11 : i64} {
  func.func @fused_graph_lstm_kernel(%arg0: memref<16x8xf32, #tpu.memory_space<vmem>>, %arg1: memref<2x8x128xf32, #tpu.memory_space<vmem>>, %arg2: memref<2x1x128xf32, #tpu.memory_space<vmem>>, %arg3: memref<2x64x128xf32, #tpu.memory_space<vmem>>, %arg4: memref<2x16x1xf32, #tpu.memory_space<vmem>>, %arg5: memref<2x16x16xf32, #tpu.memory_space<vmem>>, %arg6: memref<6x16x16xf32, #tpu.memory_space<vmem>>, %arg7: memref<6x16x1xf32, #tpu.memory_space<vmem>>, %arg8: memref<16x16xf32, #tpu.memory_space<vmem>>, %arg9: memref<64x16xf32, #tpu.memory_space<vmem>>, %arg10: memref<1x16xf32, #tpu.memory_space<vmem>>, %arg11: memref<16x16xf32, #tpu.memory_space<vmem>>) attributes {dimension_semantics = [], scalar_prefetch = 0 : i64, scratch_operands = 0 : i64, tpu.core_type = #tpu.core_type<tc>} {
    %c0 = arith.constant 0 : index
    %c0_0 = arith.constant 0 : index
    %0 = vector.load %arg0[%c0, %c0_0] : memref<16x8xf32, #tpu.memory_space<vmem>>, vector<16x8xf32>
    %c0_1 = arith.constant 0 : index
    %c0_2 = arith.constant 0 : index
    %c0_3 = arith.constant 0 : index
    %1 = vector.load %arg1[%c0_1, %c0_2, %c0_3] : memref<2x8x128xf32, #tpu.memory_space<vmem>>, vector<2x8x128xf32>
    %c0_4 = arith.constant 0 : index
    %c0_5 = arith.constant 0 : index
    %c0_6 = arith.constant 0 : index
    %2 = vector.load %arg2[%c0_4, %c0_5, %c0_6] : memref<2x1x128xf32, #tpu.memory_space<vmem>>, vector<2x1x128xf32>
    %c0_7 = arith.constant 0 : index
    %c0_8 = arith.constant 0 : index
    %c0_9 = arith.constant 0 : index
    %3 = vector.load %arg3[%c0_7, %c0_8, %c0_9] : memref<2x64x128xf32, #tpu.memory_space<vmem>>, vector<2x64x128xf32>
    %c0_10 = arith.constant 0 : index
    %c0_11 = arith.constant 0 : index
    %c0_12 = arith.constant 0 : index
    %4 = vector.load %arg4[%c0_10, %c0_11, %c0_12] : memref<2x16x1xf32, #tpu.memory_space<vmem>>, vector<2x16x1xf32>
    %c0_13 = arith.constant 0 : index
    %c0_14 = arith.constant 0 : index
    %c0_15 = arith.constant 0 : index
    %5 = vector.load %arg5[%c0_13, %c0_14, %c0_15] : memref<2x16x16xf32, #tpu.memory_space<vmem>>, vector<2x16x16xf32>
    %c0_16 = arith.constant 0 : index
    %c0_17 = arith.constant 0 : index
    %c0_18 = arith.constant 0 : index
    %6 = vector.load %arg6[%c0_16, %c0_17, %c0_18] : memref<6x16x16xf32, #tpu.memory_space<vmem>>, vector<6x16x16xf32>
    %c0_19 = arith.constant 0 : index
    %c0_20 = arith.constant 0 : index
    %c0_21 = arith.constant 0 : index
    %7 = vector.load %arg7[%c0_19, %c0_20, %c0_21] : memref<6x16x1xf32, #tpu.memory_space<vmem>>, vector<6x16x1xf32>
    %8 = vector.extract_strided_slice %1 {offsets = [0, 0, 0], sizes = [1, 8, 128], strides = [1, 1, 1]} : vector<2x8x128xf32> to vector<1x8x128xf32>
    %9 = vector.shape_cast %8 : vector<1x8x128xf32> to vector<8x128xf32>
    %cst = arith.constant dense<0.000000e+00> : vector<16x128xf32>
    %10 = tpu.matmul %0, %9, %cst {dimension_numbers = #tpu.dot_dimension_numbers<[1], [0], [0], [1], [0, 0, 1, 1], [], []>} : vector<16x8xf32>, vector<8x128xf32>, vector<16x128xf32> -> vector<16x128xf32>
    %11 = vector.extract_strided_slice %2 {offsets = [0, 0, 0], sizes = [1, 1, 128], strides = [1, 1, 1]} : vector<2x1x128xf32> to vector<1x1x128xf32>
    %12 = vector.shape_cast %11 : vector<1x1x128xf32> to vector<1x128xf32>
    %13 = vector.broadcast %12 : vector<1x128xf32> to vector<16x128xf32>
    %14 = arith.addf %10, %13 : vector<16x128xf32>
    %15 = vector.extract_strided_slice %14 {offsets = [0, 0], sizes = [16, 96], strides = [1, 1]} : vector<16x128xf32> to vector<16x96xf32>
    %16 = vector.extract_strided_slice %14 {offsets = [0, 96], sizes = [16, 32], strides = [1, 1]} : vector<16x128xf32> to vector<16x32xf32>
    %cst_22 = arith.constant 0.000000e+00 : f32
    %17 = vector.broadcast %cst_22 : f32 to vector<16x32xf32>
    %cst_23 = arith.constant 0.000000e+00 : f32
    %18 = vector.broadcast %cst_23 : f32 to vector<16x32xf32>
    %19 = vector.extract_strided_slice %4 {offsets = [0, 0, 0], sizes = [1, 16, 1], strides = [1, 1, 1]} : vector<2x16x1xf32> to vector<1x16x1xf32>
    %20 = vector.shape_cast %19 : vector<1x16x1xf32> to vector<16x1xf32>
    %21 = vector.extract_strided_slice %5 {offsets = [0, 0, 0], sizes = [1, 16, 16], strides = [1, 1, 1]} : vector<2x16x16xf32> to vector<1x16x16xf32>
    %22 = vector.shape_cast %21 : vector<1x16x16xf32> to vector<16x16xf32>
    %23 = vector.extract_strided_slice %7 {offsets = [0, 0, 0], sizes = [1, 16, 1], strides = [1, 1, 1]} : vector<6x16x1xf32> to vector<1x16x1xf32>
    %24 = vector.shape_cast %23 : vector<1x16x1xf32> to vector<16x1xf32>
    %25 = vector.extract_strided_slice %15 {offsets = [0, 0], sizes = [16, 32], strides = [1, 1]} : vector<16x96xf32> to vector<16x32xf32>
    %cst_24 = arith.constant 0.000000e+00 : f32
    %26 = vector.broadcast %cst_24 : f32 to vector<16x32xf32>
    %27 = arith.subf %26, %25 : vector<16x32xf32>
    %28 = math.exp %27 : vector<16x32xf32>
    %cst_25 = arith.constant 1.000000e+00 : f32
    %29 = vector.broadcast %cst_25 : f32 to vector<16x32xf32>
    %30 = arith.addf %29, %28 : vector<16x32xf32>
    %cst_26 = arith.constant 1.000000e+00 : f32
    %31 = vector.broadcast %cst_26 : f32 to vector<16x32xf32>
    %32 = arith.divf %31, %30 : vector<16x32xf32>
    %33 = vector.extract_strided_slice %15 {offsets = [0, 32], sizes = [16, 32], strides = [1, 1]} : vector<16x96xf32> to vector<16x32xf32>
    %cst_27 = arith.constant 0.000000e+00 : f32
    %34 = vector.broadcast %cst_27 : f32 to vector<16x32xf32>
    %35 = arith.subf %34, %33 : vector<16x32xf32>
    %36 = math.exp %35 : vector<16x32xf32>
    %cst_28 = arith.constant 1.000000e+00 : f32
    %37 = vector.broadcast %cst_28 : f32 to vector<16x32xf32>
    %38 = arith.addf %37, %36 : vector<16x32xf32>
    %cst_29 = arith.constant 1.000000e+00 : f32
    %39 = vector.broadcast %cst_29 : f32 to vector<16x32xf32>
    %40 = arith.divf %39, %38 : vector<16x32xf32>
    %41 = vector.extract_strided_slice %15 {offsets = [0, 64], sizes = [16, 32], strides = [1, 1]} : vector<16x96xf32> to vector<16x32xf32>
    %42 = math.tanh %41 : vector<16x32xf32>
    %43 = arith.mulf %32, %42 : vector<16x32xf32>
    %44 = arith.addf %43, %18 : vector<16x32xf32>
    %45 = vector.broadcast %24 : vector<16x1xf32> to vector<16x32xf32>
    %46 = arith.mulf %45, %44 : vector<16x32xf32>
    %cst_30 = arith.constant 1.000000e+00 : f32
    %47 = vector.broadcast %cst_30 : f32 to vector<16x1xf32>
    %48 = arith.subf %47, %24 : vector<16x1xf32>
    %49 = vector.broadcast %48 : vector<16x1xf32> to vector<16x32xf32>
    %50 = arith.mulf %49, %18 : vector<16x32xf32>
    %51 = arith.addf %46, %50 : vector<16x32xf32>
    %52 = math.tanh %44 : vector<16x32xf32>
    %53 = arith.mulf %40, %52 : vector<16x32xf32>
    %54 = vector.broadcast %24 : vector<16x1xf32> to vector<16x32xf32>
    %55 = arith.mulf %54, %53 : vector<16x32xf32>
    %cst_31 = arith.constant 1.000000e+00 : f32
    %56 = vector.broadcast %cst_31 : f32 to vector<16x1xf32>
    %57 = arith.subf %56, %24 : vector<16x1xf32>
    %58 = vector.broadcast %57 : vector<16x1xf32> to vector<16x32xf32>
    %59 = arith.mulf %58, %17 : vector<16x32xf32>
    %60 = arith.addf %55, %59 : vector<16x32xf32>
    %61 = tpu.concatenate %60, %51, %16 in 1 : vector<16x32xf32>, vector<16x32xf32>, vector<16x32xf32> -> vector<16x96xf32>
    %cst_32 = arith.constant dense<0.000000e+00> : vector<16x96xf32>
    %62 = tpu.matmul %22, %61, %cst_32 {dimension_numbers = #tpu.dot_dimension_numbers<[1], [0], [0], [1], [0, 0, 1, 1], [], []>} : vector<16x16xf32>, vector<16x96xf32>, vector<16x96xf32> -> vector<16x96xf32>
    %63 = vector.extract_strided_slice %62 {offsets = [0, 0], sizes = [16, 32], strides = [1, 1]} : vector<16x96xf32> to vector<16x32xf32>
    %64 = vector.extract_strided_slice %62 {offsets = [0, 32], sizes = [16, 32], strides = [1, 1]} : vector<16x96xf32> to vector<16x32xf32>
    %65 = vector.extract_strided_slice %62 {offsets = [0, 64], sizes = [16, 32], strides = [1, 1]} : vector<16x96xf32> to vector<16x32xf32>
    %cst_33 = arith.constant 1.000000e+00 : f32
    %66 = vector.broadcast %cst_33 : f32 to vector<16x1xf32>
    %67 = arith.subf %66, %20 : vector<16x1xf32>
    %68 = vector.broadcast %67 : vector<16x1xf32> to vector<16x32xf32>
    %69 = arith.mulf %68, %63 : vector<16x32xf32>
    %70 = vector.broadcast %20 : vector<16x1xf32> to vector<16x32xf32>
    %71 = arith.mulf %70, %63 : vector<16x32xf32>
    %72 = tpu.concatenate %69, %71 in 1 : vector<16x32xf32>, vector<16x32xf32> -> vector<16x64xf32>
    %73 = vector.extract_strided_slice %3 {offsets = [0, 0, 0], sizes = [1, 64, 128], strides = [1, 1, 1]} : vector<2x64x128xf32> to vector<1x64x128xf32>
    %74 = vector.shape_cast %73 : vector<1x64x128xf32> to vector<64x128xf32>
    %cst_34 = arith.constant dense<0.000000e+00> : vector<16x128xf32>
    %75 = tpu.matmul %72, %74, %cst_34 {dimension_numbers = #tpu.dot_dimension_numbers<[1], [0], [0], [1], [0, 0, 1, 1], [], []>} : vector<16x64xf32>, vector<64x128xf32>, vector<16x128xf32> -> vector<16x128xf32>
    %76 = vector.extract_strided_slice %75 {offsets = [0, 96], sizes = [16, 32], strides = [1, 1]} : vector<16x128xf32> to vector<16x32xf32>
    %77 = arith.addf %65, %76 : vector<16x32xf32>
    %cst_35 = arith.constant 0.000000e+00 : f32
    %78 = vector.broadcast %cst_35 : f32 to vector<16x32xf32>
    %79 = arith.subf %78, %77 : vector<16x32xf32>
    %80 = math.exp %79 : vector<16x32xf32>
    %cst_36 = arith.constant 1.000000e+00 : f32
    %81 = vector.broadcast %cst_36 : f32 to vector<16x32xf32>
    %82 = arith.addf %81, %80 : vector<16x32xf32>
    %cst_37 = arith.constant 1.000000e+00 : f32
    %83 = vector.broadcast %cst_37 : f32 to vector<16x32xf32>
    %84 = arith.divf %83, %82 : vector<16x32xf32>
    %cst_38 = arith.constant -1.000000e+14 : f32
    %cst_39 = arith.constant 1.000000e+14 : f32
    %85 = vector.broadcast %cst_38 : f32 to vector<16x32xf32>
    %86 = arith.maximumf %85, %64 : vector<16x32xf32>
    %87 = vector.broadcast %cst_39 : f32 to vector<16x32xf32>
    %88 = arith.minimumf %87, %86 : vector<16x32xf32>
    %89 = vector.extract_strided_slice %75 {offsets = [0, 0], sizes = [16, 96], strides = [1, 1]} : vector<16x128xf32> to vector<16x96xf32>
    %90 = arith.mulf %84, %88 : vector<16x32xf32>
    %91 = tpu.concatenate %89, %90 in 1 : vector<16x96xf32>, vector<16x32xf32> -> vector<16x128xf32>
    %92 = vector.extract_strided_slice %6 {offsets = [1, 0, 0], sizes = [1, 16, 16], strides = [1, 1, 1]} : vector<6x16x16xf32> to vector<1x16x16xf32>
    %93 = vector.shape_cast %92 : vector<1x16x16xf32> to vector<16x16xf32>
    %cst_40 = arith.constant dense<0.000000e+00> : vector<16x128xf32>
    %94 = tpu.matmul %93, %91, %cst_40 {dimension_numbers = #tpu.dot_dimension_numbers<[1], [0], [0], [1], [0, 0, 1, 1], [], []>} : vector<16x16xf32>, vector<16x128xf32>, vector<16x128xf32> -> vector<16x128xf32>
    %95 = vector.extract_strided_slice %94 {offsets = [0, 0], sizes = [16, 96], strides = [1, 1]} : vector<16x128xf32> to vector<16x96xf32>
    %96 = arith.addf %15, %95 : vector<16x96xf32>
    %97 = vector.extract_strided_slice %94 {offsets = [0, 96], sizes = [16, 32], strides = [1, 1]} : vector<16x128xf32> to vector<16x32xf32>
    %98 = arith.addf %51, %97 : vector<16x32xf32>
    %99 = vector.extract_strided_slice %7 {offsets = [1, 0, 0], sizes = [1, 16, 1], strides = [1, 1, 1]} : vector<6x16x1xf32> to vector<1x16x1xf32>
    %100 = vector.shape_cast %99 : vector<1x16x1xf32> to vector<16x1xf32>
    %101 = vector.extract_strided_slice %96 {offsets = [0, 0], sizes = [16, 32], strides = [1, 1]} : vector<16x96xf32> to vector<16x32xf32>
    %cst_41 = arith.constant 0.000000e+00 : f32
    %102 = vector.broadcast %cst_41 : f32 to vector<16x32xf32>
    %103 = arith.subf %102, %101 : vector<16x32xf32>
    %104 = math.exp %103 : vector<16x32xf32>
    %cst_42 = arith.constant 1.000000e+00 : f32
    %105 = vector.broadcast %cst_42 : f32 to vector<16x32xf32>
    %106 = arith.addf %105, %104 : vector<16x32xf32>
    %cst_43 = arith.constant 1.000000e+00 : f32
    %107 = vector.broadcast %cst_43 : f32 to vector<16x32xf32>
    %108 = arith.divf %107, %106 : vector<16x32xf32>
    %109 = vector.extract_strided_slice %96 {offsets = [0, 32], sizes = [16, 32], strides = [1, 1]} : vector<16x96xf32> to vector<16x32xf32>
    %cst_44 = arith.constant 0.000000e+00 : f32
    %110 = vector.broadcast %cst_44 : f32 to vector<16x32xf32>
    %111 = arith.subf %110, %109 : vector<16x32xf32>
    %112 = math.exp %111 : vector<16x32xf32>
    %cst_45 = arith.constant 1.000000e+00 : f32
    %113 = vector.broadcast %cst_45 : f32 to vector<16x32xf32>
    %114 = arith.addf %113, %112 : vector<16x32xf32>
    %cst_46 = arith.constant 1.000000e+00 : f32
    %115 = vector.broadcast %cst_46 : f32 to vector<16x32xf32>
    %116 = arith.divf %115, %114 : vector<16x32xf32>
    %117 = vector.extract_strided_slice %96 {offsets = [0, 64], sizes = [16, 32], strides = [1, 1]} : vector<16x96xf32> to vector<16x32xf32>
    %118 = math.tanh %117 : vector<16x32xf32>
    %119 = arith.mulf %108, %118 : vector<16x32xf32>
    %120 = arith.addf %119, %98 : vector<16x32xf32>
    %121 = vector.broadcast %100 : vector<16x1xf32> to vector<16x32xf32>
    %122 = arith.mulf %121, %120 : vector<16x32xf32>
    %cst_47 = arith.constant 1.000000e+00 : f32
    %123 = vector.broadcast %cst_47 : f32 to vector<16x1xf32>
    %124 = arith.subf %123, %100 : vector<16x1xf32>
    %125 = vector.broadcast %124 : vector<16x1xf32> to vector<16x32xf32>
    %126 = arith.mulf %125, %98 : vector<16x32xf32>
    %127 = arith.addf %122, %126 : vector<16x32xf32>
    %128 = math.tanh %120 : vector<16x32xf32>
    %129 = arith.mulf %116, %128 : vector<16x32xf32>
    %130 = vector.broadcast %100 : vector<16x1xf32> to vector<16x32xf32>
    %131 = arith.mulf %130, %129 : vector<16x32xf32>
    %cst_48 = arith.constant 1.000000e+00 : f32
    %132 = vector.broadcast %cst_48 : f32 to vector<16x1xf32>
    %133 = arith.subf %132, %100 : vector<16x1xf32>
    %134 = vector.broadcast %133 : vector<16x1xf32> to vector<16x32xf32>
    %135 = arith.mulf %134, %60 : vector<16x32xf32>
    %136 = arith.addf %131, %135 : vector<16x32xf32>
    %137 = tpu.concatenate %136, %127, %16 in 1 : vector<16x32xf32>, vector<16x32xf32>, vector<16x32xf32> -> vector<16x96xf32>
    %cst_49 = arith.constant dense<0.000000e+00> : vector<16x96xf32>
    %138 = tpu.matmul %22, %137, %cst_49 {dimension_numbers = #tpu.dot_dimension_numbers<[1], [0], [0], [1], [0, 0, 1, 1], [], []>} : vector<16x16xf32>, vector<16x96xf32>, vector<16x96xf32> -> vector<16x96xf32>
    %139 = vector.extract_strided_slice %138 {offsets = [0, 0], sizes = [16, 32], strides = [1, 1]} : vector<16x96xf32> to vector<16x32xf32>
    %140 = vector.extract_strided_slice %138 {offsets = [0, 32], sizes = [16, 32], strides = [1, 1]} : vector<16x96xf32> to vector<16x32xf32>
    %141 = vector.extract_strided_slice %138 {offsets = [0, 64], sizes = [16, 32], strides = [1, 1]} : vector<16x96xf32> to vector<16x32xf32>
    %cst_50 = arith.constant 1.000000e+00 : f32
    %142 = vector.broadcast %cst_50 : f32 to vector<16x1xf32>
    %143 = arith.subf %142, %20 : vector<16x1xf32>
    %144 = vector.broadcast %143 : vector<16x1xf32> to vector<16x32xf32>
    %145 = arith.mulf %144, %139 : vector<16x32xf32>
    %146 = vector.broadcast %20 : vector<16x1xf32> to vector<16x32xf32>
    %147 = arith.mulf %146, %139 : vector<16x32xf32>
    %148 = tpu.concatenate %145, %147 in 1 : vector<16x32xf32>, vector<16x32xf32> -> vector<16x64xf32>
    %149 = vector.extract_strided_slice %3 {offsets = [0, 0, 0], sizes = [1, 64, 128], strides = [1, 1, 1]} : vector<2x64x128xf32> to vector<1x64x128xf32>
    %150 = vector.shape_cast %149 : vector<1x64x128xf32> to vector<64x128xf32>
    %cst_51 = arith.constant dense<0.000000e+00> : vector<16x128xf32>
    %151 = tpu.matmul %148, %150, %cst_51 {dimension_numbers = #tpu.dot_dimension_numbers<[1], [0], [0], [1], [0, 0, 1, 1], [], []>} : vector<16x64xf32>, vector<64x128xf32>, vector<16x128xf32> -> vector<16x128xf32>
    %152 = vector.extract_strided_slice %151 {offsets = [0, 96], sizes = [16, 32], strides = [1, 1]} : vector<16x128xf32> to vector<16x32xf32>
    %153 = arith.addf %141, %152 : vector<16x32xf32>
    %cst_52 = arith.constant 0.000000e+00 : f32
    %154 = vector.broadcast %cst_52 : f32 to vector<16x32xf32>
    %155 = arith.subf %154, %153 : vector<16x32xf32>
    %156 = math.exp %155 : vector<16x32xf32>
    %cst_53 = arith.constant 1.000000e+00 : f32
    %157 = vector.broadcast %cst_53 : f32 to vector<16x32xf32>
    %158 = arith.addf %157, %156 : vector<16x32xf32>
    %cst_54 = arith.constant 1.000000e+00 : f32
    %159 = vector.broadcast %cst_54 : f32 to vector<16x32xf32>
    %160 = arith.divf %159, %158 : vector<16x32xf32>
    %cst_55 = arith.constant -1.000000e+14 : f32
    %cst_56 = arith.constant 1.000000e+14 : f32
    %161 = vector.broadcast %cst_55 : f32 to vector<16x32xf32>
    %162 = arith.maximumf %161, %140 : vector<16x32xf32>
    %163 = vector.broadcast %cst_56 : f32 to vector<16x32xf32>
    %164 = arith.minimumf %163, %162 : vector<16x32xf32>
    %165 = vector.extract_strided_slice %151 {offsets = [0, 0], sizes = [16, 96], strides = [1, 1]} : vector<16x128xf32> to vector<16x96xf32>
    %166 = arith.mulf %160, %164 : vector<16x32xf32>
    %167 = tpu.concatenate %165, %166 in 1 : vector<16x96xf32>, vector<16x32xf32> -> vector<16x128xf32>
    %168 = vector.extract_strided_slice %6 {offsets = [2, 0, 0], sizes = [1, 16, 16], strides = [1, 1, 1]} : vector<6x16x16xf32> to vector<1x16x16xf32>
    %169 = vector.shape_cast %168 : vector<1x16x16xf32> to vector<16x16xf32>
    %cst_57 = arith.constant dense<0.000000e+00> : vector<16x128xf32>
    %170 = tpu.matmul %169, %167, %cst_57 {dimension_numbers = #tpu.dot_dimension_numbers<[1], [0], [0], [1], [0, 0, 1, 1], [], []>} : vector<16x16xf32>, vector<16x128xf32>, vector<16x128xf32> -> vector<16x128xf32>
    %171 = vector.extract_strided_slice %170 {offsets = [0, 0], sizes = [16, 96], strides = [1, 1]} : vector<16x128xf32> to vector<16x96xf32>
    %172 = arith.addf %96, %171 : vector<16x96xf32>
    %173 = vector.extract_strided_slice %170 {offsets = [0, 96], sizes = [16, 32], strides = [1, 1]} : vector<16x128xf32> to vector<16x32xf32>
    %174 = arith.addf %127, %173 : vector<16x32xf32>
    %175 = vector.extract_strided_slice %7 {offsets = [2, 0, 0], sizes = [1, 16, 1], strides = [1, 1, 1]} : vector<6x16x1xf32> to vector<1x16x1xf32>
    %176 = vector.shape_cast %175 : vector<1x16x1xf32> to vector<16x1xf32>
    %177 = vector.extract_strided_slice %172 {offsets = [0, 0], sizes = [16, 32], strides = [1, 1]} : vector<16x96xf32> to vector<16x32xf32>
    %cst_58 = arith.constant 0.000000e+00 : f32
    %178 = vector.broadcast %cst_58 : f32 to vector<16x32xf32>
    %179 = arith.subf %178, %177 : vector<16x32xf32>
    %180 = math.exp %179 : vector<16x32xf32>
    %cst_59 = arith.constant 1.000000e+00 : f32
    %181 = vector.broadcast %cst_59 : f32 to vector<16x32xf32>
    %182 = arith.addf %181, %180 : vector<16x32xf32>
    %cst_60 = arith.constant 1.000000e+00 : f32
    %183 = vector.broadcast %cst_60 : f32 to vector<16x32xf32>
    %184 = arith.divf %183, %182 : vector<16x32xf32>
    %185 = vector.extract_strided_slice %172 {offsets = [0, 32], sizes = [16, 32], strides = [1, 1]} : vector<16x96xf32> to vector<16x32xf32>
    %cst_61 = arith.constant 0.000000e+00 : f32
    %186 = vector.broadcast %cst_61 : f32 to vector<16x32xf32>
    %187 = arith.subf %186, %185 : vector<16x32xf32>
    %188 = math.exp %187 : vector<16x32xf32>
    %cst_62 = arith.constant 1.000000e+00 : f32
    %189 = vector.broadcast %cst_62 : f32 to vector<16x32xf32>
    %190 = arith.addf %189, %188 : vector<16x32xf32>
    %cst_63 = arith.constant 1.000000e+00 : f32
    %191 = vector.broadcast %cst_63 : f32 to vector<16x32xf32>
    %192 = arith.divf %191, %190 : vector<16x32xf32>
    %193 = vector.extract_strided_slice %172 {offsets = [0, 64], sizes = [16, 32], strides = [1, 1]} : vector<16x96xf32> to vector<16x32xf32>
    %194 = math.tanh %193 : vector<16x32xf32>
    %195 = arith.mulf %184, %194 : vector<16x32xf32>
    %196 = arith.addf %195, %174 : vector<16x32xf32>
    %197 = math.tanh %196 : vector<16x32xf32>
    %198 = arith.mulf %192, %197 : vector<16x32xf32>
    %199 = vector.broadcast %176 : vector<16x1xf32> to vector<16x32xf32>
    %200 = arith.mulf %199, %198 : vector<16x32xf32>
    %cst_64 = arith.constant 1.000000e+00 : f32
    %201 = vector.broadcast %cst_64 : f32 to vector<16x1xf32>
    %202 = arith.subf %201, %176 : vector<16x1xf32>
    %203 = vector.broadcast %202 : vector<16x1xf32> to vector<16x32xf32>
    %204 = arith.mulf %203, %136 : vector<16x32xf32>
    %205 = arith.addf %200, %204 : vector<16x32xf32>
    %206 = vector.extract_strided_slice %1 {offsets = [1, 0, 0], sizes = [1, 8, 128], strides = [1, 1, 1]} : vector<2x8x128xf32> to vector<1x8x128xf32>
    %207 = vector.shape_cast %206 : vector<1x8x128xf32> to vector<8x128xf32>
    %cst_65 = arith.constant dense<0.000000e+00> : vector<16x128xf32>
    %208 = tpu.matmul %0, %207, %cst_65 {dimension_numbers = #tpu.dot_dimension_numbers<[1], [0], [0], [1], [0, 0, 1, 1], [], []>} : vector<16x8xf32>, vector<8x128xf32>, vector<16x128xf32> -> vector<16x128xf32>
    %209 = vector.extract_strided_slice %2 {offsets = [1, 0, 0], sizes = [1, 1, 128], strides = [1, 1, 1]} : vector<2x1x128xf32> to vector<1x1x128xf32>
    %210 = vector.shape_cast %209 : vector<1x1x128xf32> to vector<1x128xf32>
    %211 = vector.broadcast %210 : vector<1x128xf32> to vector<16x128xf32>
    %212 = arith.addf %208, %211 : vector<16x128xf32>
    %213 = vector.extract_strided_slice %212 {offsets = [0, 0], sizes = [16, 96], strides = [1, 1]} : vector<16x128xf32> to vector<16x96xf32>
    %214 = vector.extract_strided_slice %212 {offsets = [0, 96], sizes = [16, 32], strides = [1, 1]} : vector<16x128xf32> to vector<16x32xf32>
    %cst_66 = arith.constant 0.000000e+00 : f32
    %215 = vector.broadcast %cst_66 : f32 to vector<16x32xf32>
    %cst_67 = arith.constant 0.000000e+00 : f32
    %216 = vector.broadcast %cst_67 : f32 to vector<16x32xf32>
    %217 = vector.extract_strided_slice %4 {offsets = [1, 0, 0], sizes = [1, 16, 1], strides = [1, 1, 1]} : vector<2x16x1xf32> to vector<1x16x1xf32>
    %218 = vector.shape_cast %217 : vector<1x16x1xf32> to vector<16x1xf32>
    %219 = vector.extract_strided_slice %5 {offsets = [1, 0, 0], sizes = [1, 16, 16], strides = [1, 1, 1]} : vector<2x16x16xf32> to vector<1x16x16xf32>
    %220 = vector.shape_cast %219 : vector<1x16x16xf32> to vector<16x16xf32>
    %221 = vector.extract_strided_slice %7 {offsets = [3, 0, 0], sizes = [1, 16, 1], strides = [1, 1, 1]} : vector<6x16x1xf32> to vector<1x16x1xf32>
    %222 = vector.shape_cast %221 : vector<1x16x1xf32> to vector<16x1xf32>
    %223 = vector.extract_strided_slice %213 {offsets = [0, 0], sizes = [16, 32], strides = [1, 1]} : vector<16x96xf32> to vector<16x32xf32>
    %cst_68 = arith.constant 0.000000e+00 : f32
    %224 = vector.broadcast %cst_68 : f32 to vector<16x32xf32>
    %225 = arith.subf %224, %223 : vector<16x32xf32>
    %226 = math.exp %225 : vector<16x32xf32>
    %cst_69 = arith.constant 1.000000e+00 : f32
    %227 = vector.broadcast %cst_69 : f32 to vector<16x32xf32>
    %228 = arith.addf %227, %226 : vector<16x32xf32>
    %cst_70 = arith.constant 1.000000e+00 : f32
    %229 = vector.broadcast %cst_70 : f32 to vector<16x32xf32>
    %230 = arith.divf %229, %228 : vector<16x32xf32>
    %231 = vector.extract_strided_slice %213 {offsets = [0, 32], sizes = [16, 32], strides = [1, 1]} : vector<16x96xf32> to vector<16x32xf32>
    %cst_71 = arith.constant 0.000000e+00 : f32
    %232 = vector.broadcast %cst_71 : f32 to vector<16x32xf32>
    %233 = arith.subf %232, %231 : vector<16x32xf32>
    %234 = math.exp %233 : vector<16x32xf32>
    %cst_72 = arith.constant 1.000000e+00 : f32
    %235 = vector.broadcast %cst_72 : f32 to vector<16x32xf32>
    %236 = arith.addf %235, %234 : vector<16x32xf32>
    %cst_73 = arith.constant 1.000000e+00 : f32
    %237 = vector.broadcast %cst_73 : f32 to vector<16x32xf32>
    %238 = arith.divf %237, %236 : vector<16x32xf32>
    %239 = vector.extract_strided_slice %213 {offsets = [0, 64], sizes = [16, 32], strides = [1, 1]} : vector<16x96xf32> to vector<16x32xf32>
    %240 = math.tanh %239 : vector<16x32xf32>
    %241 = arith.mulf %230, %240 : vector<16x32xf32>
    %242 = arith.addf %241, %216 : vector<16x32xf32>
    %243 = vector.broadcast %222 : vector<16x1xf32> to vector<16x32xf32>
    %244 = arith.mulf %243, %242 : vector<16x32xf32>
    %cst_74 = arith.constant 1.000000e+00 : f32
    %245 = vector.broadcast %cst_74 : f32 to vector<16x1xf32>
    %246 = arith.subf %245, %222 : vector<16x1xf32>
    %247 = vector.broadcast %246 : vector<16x1xf32> to vector<16x32xf32>
    %248 = arith.mulf %247, %216 : vector<16x32xf32>
    %249 = arith.addf %244, %248 : vector<16x32xf32>
    %250 = math.tanh %242 : vector<16x32xf32>
    %251 = arith.mulf %238, %250 : vector<16x32xf32>
    %252 = vector.broadcast %222 : vector<16x1xf32> to vector<16x32xf32>
    %253 = arith.mulf %252, %251 : vector<16x32xf32>
    %cst_75 = arith.constant 1.000000e+00 : f32
    %254 = vector.broadcast %cst_75 : f32 to vector<16x1xf32>
    %255 = arith.subf %254, %222 : vector<16x1xf32>
    %256 = vector.broadcast %255 : vector<16x1xf32> to vector<16x32xf32>
    %257 = arith.mulf %256, %215 : vector<16x32xf32>
    %258 = arith.addf %253, %257 : vector<16x32xf32>
    %259 = tpu.concatenate %258, %249, %214 in 1 : vector<16x32xf32>, vector<16x32xf32>, vector<16x32xf32> -> vector<16x96xf32>
    %cst_76 = arith.constant dense<0.000000e+00> : vector<16x96xf32>
    %260 = tpu.matmul %220, %259, %cst_76 {dimension_numbers = #tpu.dot_dimension_numbers<[1], [0], [0], [1], [0, 0, 1, 1], [], []>} : vector<16x16xf32>, vector<16x96xf32>, vector<16x96xf32> -> vector<16x96xf32>
    %261 = vector.extract_strided_slice %260 {offsets = [0, 0], sizes = [16, 32], strides = [1, 1]} : vector<16x96xf32> to vector<16x32xf32>
    %262 = vector.extract_strided_slice %260 {offsets = [0, 32], sizes = [16, 32], strides = [1, 1]} : vector<16x96xf32> to vector<16x32xf32>
    %263 = vector.extract_strided_slice %260 {offsets = [0, 64], sizes = [16, 32], strides = [1, 1]} : vector<16x96xf32> to vector<16x32xf32>
    %cst_77 = arith.constant 1.000000e+00 : f32
    %264 = vector.broadcast %cst_77 : f32 to vector<16x1xf32>
    %265 = arith.subf %264, %218 : vector<16x1xf32>
    %266 = vector.broadcast %265 : vector<16x1xf32> to vector<16x32xf32>
    %267 = arith.mulf %266, %261 : vector<16x32xf32>
    %268 = vector.broadcast %218 : vector<16x1xf32> to vector<16x32xf32>
    %269 = arith.mulf %268, %261 : vector<16x32xf32>
    %270 = tpu.concatenate %267, %269 in 1 : vector<16x32xf32>, vector<16x32xf32> -> vector<16x64xf32>
    %271 = vector.extract_strided_slice %3 {offsets = [1, 0, 0], sizes = [1, 64, 128], strides = [1, 1, 1]} : vector<2x64x128xf32> to vector<1x64x128xf32>
    %272 = vector.shape_cast %271 : vector<1x64x128xf32> to vector<64x128xf32>
    %cst_78 = arith.constant dense<0.000000e+00> : vector<16x128xf32>
    %273 = tpu.matmul %270, %272, %cst_78 {dimension_numbers = #tpu.dot_dimension_numbers<[1], [0], [0], [1], [0, 0, 1, 1], [], []>} : vector<16x64xf32>, vector<64x128xf32>, vector<16x128xf32> -> vector<16x128xf32>
    %274 = vector.extract_strided_slice %273 {offsets = [0, 96], sizes = [16, 32], strides = [1, 1]} : vector<16x128xf32> to vector<16x32xf32>
    %275 = arith.addf %263, %274 : vector<16x32xf32>
    %cst_79 = arith.constant 0.000000e+00 : f32
    %276 = vector.broadcast %cst_79 : f32 to vector<16x32xf32>
    %277 = arith.subf %276, %275 : vector<16x32xf32>
    %278 = math.exp %277 : vector<16x32xf32>
    %cst_80 = arith.constant 1.000000e+00 : f32
    %279 = vector.broadcast %cst_80 : f32 to vector<16x32xf32>
    %280 = arith.addf %279, %278 : vector<16x32xf32>
    %cst_81 = arith.constant 1.000000e+00 : f32
    %281 = vector.broadcast %cst_81 : f32 to vector<16x32xf32>
    %282 = arith.divf %281, %280 : vector<16x32xf32>
    %cst_82 = arith.constant -1.000000e+14 : f32
    %cst_83 = arith.constant 1.000000e+14 : f32
    %283 = vector.broadcast %cst_82 : f32 to vector<16x32xf32>
    %284 = arith.maximumf %283, %262 : vector<16x32xf32>
    %285 = vector.broadcast %cst_83 : f32 to vector<16x32xf32>
    %286 = arith.minimumf %285, %284 : vector<16x32xf32>
    %287 = vector.extract_strided_slice %273 {offsets = [0, 0], sizes = [16, 96], strides = [1, 1]} : vector<16x128xf32> to vector<16x96xf32>
    %288 = arith.mulf %282, %286 : vector<16x32xf32>
    %289 = tpu.concatenate %287, %288 in 1 : vector<16x96xf32>, vector<16x32xf32> -> vector<16x128xf32>
    %290 = vector.extract_strided_slice %6 {offsets = [4, 0, 0], sizes = [1, 16, 16], strides = [1, 1, 1]} : vector<6x16x16xf32> to vector<1x16x16xf32>
    %291 = vector.shape_cast %290 : vector<1x16x16xf32> to vector<16x16xf32>
    %cst_84 = arith.constant dense<0.000000e+00> : vector<16x128xf32>
    %292 = tpu.matmul %291, %289, %cst_84 {dimension_numbers = #tpu.dot_dimension_numbers<[1], [0], [0], [1], [0, 0, 1, 1], [], []>} : vector<16x16xf32>, vector<16x128xf32>, vector<16x128xf32> -> vector<16x128xf32>
    %293 = vector.extract_strided_slice %292 {offsets = [0, 0], sizes = [16, 96], strides = [1, 1]} : vector<16x128xf32> to vector<16x96xf32>
    %294 = arith.addf %213, %293 : vector<16x96xf32>
    %295 = vector.extract_strided_slice %292 {offsets = [0, 96], sizes = [16, 32], strides = [1, 1]} : vector<16x128xf32> to vector<16x32xf32>
    %296 = arith.addf %249, %295 : vector<16x32xf32>
    %297 = vector.extract_strided_slice %7 {offsets = [4, 0, 0], sizes = [1, 16, 1], strides = [1, 1, 1]} : vector<6x16x1xf32> to vector<1x16x1xf32>
    %298 = vector.shape_cast %297 : vector<1x16x1xf32> to vector<16x1xf32>
    %299 = vector.extract_strided_slice %294 {offsets = [0, 0], sizes = [16, 32], strides = [1, 1]} : vector<16x96xf32> to vector<16x32xf32>
    %cst_85 = arith.constant 0.000000e+00 : f32
    %300 = vector.broadcast %cst_85 : f32 to vector<16x32xf32>
    %301 = arith.subf %300, %299 : vector<16x32xf32>
    %302 = math.exp %301 : vector<16x32xf32>
    %cst_86 = arith.constant 1.000000e+00 : f32
    %303 = vector.broadcast %cst_86 : f32 to vector<16x32xf32>
    %304 = arith.addf %303, %302 : vector<16x32xf32>
    %cst_87 = arith.constant 1.000000e+00 : f32
    %305 = vector.broadcast %cst_87 : f32 to vector<16x32xf32>
    %306 = arith.divf %305, %304 : vector<16x32xf32>
    %307 = vector.extract_strided_slice %294 {offsets = [0, 32], sizes = [16, 32], strides = [1, 1]} : vector<16x96xf32> to vector<16x32xf32>
    %cst_88 = arith.constant 0.000000e+00 : f32
    %308 = vector.broadcast %cst_88 : f32 to vector<16x32xf32>
    %309 = arith.subf %308, %307 : vector<16x32xf32>
    %310 = math.exp %309 : vector<16x32xf32>
    %cst_89 = arith.constant 1.000000e+00 : f32
    %311 = vector.broadcast %cst_89 : f32 to vector<16x32xf32>
    %312 = arith.addf %311, %310 : vector<16x32xf32>
    %cst_90 = arith.constant 1.000000e+00 : f32
    %313 = vector.broadcast %cst_90 : f32 to vector<16x32xf32>
    %314 = arith.divf %313, %312 : vector<16x32xf32>
    %315 = vector.extract_strided_slice %294 {offsets = [0, 64], sizes = [16, 32], strides = [1, 1]} : vector<16x96xf32> to vector<16x32xf32>
    %316 = math.tanh %315 : vector<16x32xf32>
    %317 = arith.mulf %306, %316 : vector<16x32xf32>
    %318 = arith.addf %317, %296 : vector<16x32xf32>
    %319 = vector.broadcast %298 : vector<16x1xf32> to vector<16x32xf32>
    %320 = arith.mulf %319, %318 : vector<16x32xf32>
    %cst_91 = arith.constant 1.000000e+00 : f32
    %321 = vector.broadcast %cst_91 : f32 to vector<16x1xf32>
    %322 = arith.subf %321, %298 : vector<16x1xf32>
    %323 = vector.broadcast %322 : vector<16x1xf32> to vector<16x32xf32>
    %324 = arith.mulf %323, %296 : vector<16x32xf32>
    %325 = arith.addf %320, %324 : vector<16x32xf32>
    %326 = math.tanh %318 : vector<16x32xf32>
    %327 = arith.mulf %314, %326 : vector<16x32xf32>
    %328 = vector.broadcast %298 : vector<16x1xf32> to vector<16x32xf32>
    %329 = arith.mulf %328, %327 : vector<16x32xf32>
    %cst_92 = arith.constant 1.000000e+00 : f32
    %330 = vector.broadcast %cst_92 : f32 to vector<16x1xf32>
    %331 = arith.subf %330, %298 : vector<16x1xf32>
    %332 = vector.broadcast %331 : vector<16x1xf32> to vector<16x32xf32>
    %333 = arith.mulf %332, %258 : vector<16x32xf32>
    %334 = arith.addf %329, %333 : vector<16x32xf32>
    %335 = tpu.concatenate %334, %325, %214 in 1 : vector<16x32xf32>, vector<16x32xf32>, vector<16x32xf32> -> vector<16x96xf32>
    %cst_93 = arith.constant dense<0.000000e+00> : vector<16x96xf32>
    %336 = tpu.matmul %220, %335, %cst_93 {dimension_numbers = #tpu.dot_dimension_numbers<[1], [0], [0], [1], [0, 0, 1, 1], [], []>} : vector<16x16xf32>, vector<16x96xf32>, vector<16x96xf32> -> vector<16x96xf32>
    %337 = vector.extract_strided_slice %336 {offsets = [0, 0], sizes = [16, 32], strides = [1, 1]} : vector<16x96xf32> to vector<16x32xf32>
    %338 = vector.extract_strided_slice %336 {offsets = [0, 32], sizes = [16, 32], strides = [1, 1]} : vector<16x96xf32> to vector<16x32xf32>
    %339 = vector.extract_strided_slice %336 {offsets = [0, 64], sizes = [16, 32], strides = [1, 1]} : vector<16x96xf32> to vector<16x32xf32>
    %cst_94 = arith.constant 1.000000e+00 : f32
    %340 = vector.broadcast %cst_94 : f32 to vector<16x1xf32>
    %341 = arith.subf %340, %218 : vector<16x1xf32>
    %342 = vector.broadcast %341 : vector<16x1xf32> to vector<16x32xf32>
    %343 = arith.mulf %342, %337 : vector<16x32xf32>
    %344 = vector.broadcast %218 : vector<16x1xf32> to vector<16x32xf32>
    %345 = arith.mulf %344, %337 : vector<16x32xf32>
    %346 = tpu.concatenate %343, %345 in 1 : vector<16x32xf32>, vector<16x32xf32> -> vector<16x64xf32>
    %347 = vector.extract_strided_slice %3 {offsets = [1, 0, 0], sizes = [1, 64, 128], strides = [1, 1, 1]} : vector<2x64x128xf32> to vector<1x64x128xf32>
    %348 = vector.shape_cast %347 : vector<1x64x128xf32> to vector<64x128xf32>
    %cst_95 = arith.constant dense<0.000000e+00> : vector<16x128xf32>
    %349 = tpu.matmul %346, %348, %cst_95 {dimension_numbers = #tpu.dot_dimension_numbers<[1], [0], [0], [1], [0, 0, 1, 1], [], []>} : vector<16x64xf32>, vector<64x128xf32>, vector<16x128xf32> -> vector<16x128xf32>
    %350 = vector.extract_strided_slice %349 {offsets = [0, 96], sizes = [16, 32], strides = [1, 1]} : vector<16x128xf32> to vector<16x32xf32>
    %351 = arith.addf %339, %350 : vector<16x32xf32>
    %cst_96 = arith.constant 0.000000e+00 : f32
    %352 = vector.broadcast %cst_96 : f32 to vector<16x32xf32>
    %353 = arith.subf %352, %351 : vector<16x32xf32>
    %354 = math.exp %353 : vector<16x32xf32>
    %cst_97 = arith.constant 1.000000e+00 : f32
    %355 = vector.broadcast %cst_97 : f32 to vector<16x32xf32>
    %356 = arith.addf %355, %354 : vector<16x32xf32>
    %cst_98 = arith.constant 1.000000e+00 : f32
    %357 = vector.broadcast %cst_98 : f32 to vector<16x32xf32>
    %358 = arith.divf %357, %356 : vector<16x32xf32>
    %cst_99 = arith.constant -1.000000e+14 : f32
    %cst_100 = arith.constant 1.000000e+14 : f32
    %359 = vector.broadcast %cst_99 : f32 to vector<16x32xf32>
    %360 = arith.maximumf %359, %338 : vector<16x32xf32>
    %361 = vector.broadcast %cst_100 : f32 to vector<16x32xf32>
    %362 = arith.minimumf %361, %360 : vector<16x32xf32>
    %363 = vector.extract_strided_slice %349 {offsets = [0, 0], sizes = [16, 96], strides = [1, 1]} : vector<16x128xf32> to vector<16x96xf32>
    %364 = arith.mulf %358, %362 : vector<16x32xf32>
    %365 = tpu.concatenate %363, %364 in 1 : vector<16x96xf32>, vector<16x32xf32> -> vector<16x128xf32>
    %366 = vector.extract_strided_slice %6 {offsets = [5, 0, 0], sizes = [1, 16, 16], strides = [1, 1, 1]} : vector<6x16x16xf32> to vector<1x16x16xf32>
    %367 = vector.shape_cast %366 : vector<1x16x16xf32> to vector<16x16xf32>
    %cst_101 = arith.constant dense<0.000000e+00> : vector<16x128xf32>
    %368 = tpu.matmul %367, %365, %cst_101 {dimension_numbers = #tpu.dot_dimension_numbers<[1], [0], [0], [1], [0, 0, 1, 1], [], []>} : vector<16x16xf32>, vector<16x128xf32>, vector<16x128xf32> -> vector<16x128xf32>
    %369 = vector.extract_strided_slice %368 {offsets = [0, 0], sizes = [16, 96], strides = [1, 1]} : vector<16x128xf32> to vector<16x96xf32>
    %370 = arith.addf %294, %369 : vector<16x96xf32>
    %371 = vector.extract_strided_slice %368 {offsets = [0, 96], sizes = [16, 32], strides = [1, 1]} : vector<16x128xf32> to vector<16x32xf32>
    %372 = arith.addf %325, %371 : vector<16x32xf32>
    %373 = vector.extract_strided_slice %7 {offsets = [5, 0, 0], sizes = [1, 16, 1], strides = [1, 1, 1]} : vector<6x16x1xf32> to vector<1x16x1xf32>
    %374 = vector.shape_cast %373 : vector<1x16x1xf32> to vector<16x1xf32>
    %375 = vector.extract_strided_slice %370 {offsets = [0, 0], sizes = [16, 32], strides = [1, 1]} : vector<16x96xf32> to vector<16x32xf32>
    %cst_102 = arith.constant 0.000000e+00 : f32
    %376 = vector.broadcast %cst_102 : f32 to vector<16x32xf32>
    %377 = arith.subf %376, %375 : vector<16x32xf32>
    %378 = math.exp %377 : vector<16x32xf32>
    %cst_103 = arith.constant 1.000000e+00 : f32
    %379 = vector.broadcast %cst_103 : f32 to vector<16x32xf32>
    %380 = arith.addf %379, %378 : vector<16x32xf32>
    %cst_104 = arith.constant 1.000000e+00 : f32
    %381 = vector.broadcast %cst_104 : f32 to vector<16x32xf32>
    %382 = arith.divf %381, %380 : vector<16x32xf32>
    %383 = vector.extract_strided_slice %370 {offsets = [0, 32], sizes = [16, 32], strides = [1, 1]} : vector<16x96xf32> to vector<16x32xf32>
    %cst_105 = arith.constant 0.000000e+00 : f32
    %384 = vector.broadcast %cst_105 : f32 to vector<16x32xf32>
    %385 = arith.subf %384, %383 : vector<16x32xf32>
    %386 = math.exp %385 : vector<16x32xf32>
    %cst_106 = arith.constant 1.000000e+00 : f32
    %387 = vector.broadcast %cst_106 : f32 to vector<16x32xf32>
    %388 = arith.addf %387, %386 : vector<16x32xf32>
    %cst_107 = arith.constant 1.000000e+00 : f32
    %389 = vector.broadcast %cst_107 : f32 to vector<16x32xf32>
    %390 = arith.divf %389, %388 : vector<16x32xf32>
    %391 = vector.extract_strided_slice %370 {offsets = [0, 64], sizes = [16, 32], strides = [1, 1]} : vector<16x96xf32> to vector<16x32xf32>
    %392 = math.tanh %391 : vector<16x32xf32>
    %393 = arith.mulf %382, %392 : vector<16x32xf32>
    %394 = arith.addf %393, %372 : vector<16x32xf32>
    %395 = math.tanh %394 : vector<16x32xf32>
    %396 = arith.mulf %390, %395 : vector<16x32xf32>
    %397 = vector.broadcast %374 : vector<16x1xf32> to vector<16x32xf32>
    %398 = arith.mulf %397, %396 : vector<16x32xf32>
    %cst_108 = arith.constant 1.000000e+00 : f32
    %399 = vector.broadcast %cst_108 : f32 to vector<16x1xf32>
    %400 = arith.subf %399, %374 : vector<16x1xf32>
    %401 = vector.broadcast %400 : vector<16x1xf32> to vector<16x32xf32>
    %402 = arith.mulf %401, %334 : vector<16x32xf32>
    %403 = arith.addf %398, %402 : vector<16x32xf32>
    %404 = tpu.concatenate %205, %403 in 1 : vector<16x32xf32>, vector<16x32xf32> -> vector<16x64xf32>
    %c0_109 = arith.constant 0 : index
    %c0_110 = arith.constant 0 : index
    %405 = vector.load %arg8[%c0_109, %c0_110] : memref<16x16xf32, #tpu.memory_space<vmem>>, vector<16x16xf32>
    %cst_111 = arith.constant dense<0.000000e+00> : vector<16x64xf32>
    %406 = tpu.matmul %405, %404, %cst_111 {dimension_numbers = #tpu.dot_dimension_numbers<[1], [0], [0], [1], [0, 0, 1, 1], [], []>} : vector<16x16xf32>, vector<16x64xf32>, vector<16x64xf32> -> vector<16x64xf32>
    %c0_112 = arith.constant 0 : index
    %c0_113 = arith.constant 0 : index
    %407 = vector.load %arg9[%c0_112, %c0_113] : memref<64x16xf32, #tpu.memory_space<vmem>>, vector<64x16xf32>
    %cst_114 = arith.constant dense<0.000000e+00> : vector<16x16xf32>
    %408 = tpu.matmul %406, %407, %cst_114 {dimension_numbers = #tpu.dot_dimension_numbers<[1], [0], [0], [1], [0, 0, 1, 1], [], []>} : vector<16x64xf32>, vector<64x16xf32>, vector<16x16xf32> -> vector<16x16xf32>
    %c0_115 = arith.constant 0 : index
    %c0_116 = arith.constant 0 : index
    %409 = vector.load %arg10[%c0_115, %c0_116] : memref<1x16xf32, #tpu.memory_space<vmem>>, vector<1x16xf32>
    %410 = vector.broadcast %409 : vector<1x16xf32> to vector<16x16xf32>
    %411 = arith.addf %408, %410 : vector<16x16xf32>
    %c0_117 = arith.constant 0 : index
    %c0_118 = arith.constant 0 : index
    %412 = vector.load %arg11[%c0_117, %c0_118] : memref<16x16xf32, #tpu.memory_space<vmem>>, vector<16x16xf32>
    tpu.vector_store %arg11[%c0_117, %c0_118], %411 {strides = array<i32>} : memref<16x16xf32, #tpu.memory_space<vmem>>, vector<16x16xf32>,
    return
  }
}

</mosaic_0001>

<bundles_post_ra>
// kernel: tpu_custom_call.1
= control target key start
LH: loop header
LB: loop body
LE: loop exit
PB: predicated region body
PF: predicated region fallthrough
CT: control target
= control target key end

     0   :  { %16 = vsyncpa [#allocation3], 0  ;;  %s3680_s0 = inlined_call_operand.vmem [shape: f32[16,8], index: 0, kind: input, shape index: {}]   ;;  %s3681_s1 = inlined_call_operand.hbm [shape: f32[2,8,128], index: 1, kind: input, shape index: {}]   ;;  %s3682_s2 = inlined_call_operand.vmem [shape: f32[2,1,128], index: 2, kind: input, shape index: {}]   ;;  %s3683_s3 = inlined_call_operand.vmem [shape: f32[2,64,128], index: 3, kind: input, shape index: {}]   ;;  %s3684_s4 = inlined_call_operand.vmem [shape: f32[2,16,1], index: 4, kind: input, shape index: {}]   ;;  %s3685_s5 = inlined_call_operand.vmem [shape: f32[2,16,16], index: 5, kind: input, shape index: {}]   ;;  %s3686_s6 = inlined_call_operand.vmem [shape: f32[6,16,16], index: 6, kind: input, shape index: {}]   ;;  %s3687_s7 = inlined_call_operand.vmem [shape: f32[6,16,1], index: 7, kind: input, shape index: {}]   ;;  %s3688_s8 = inlined_call_operand.hbm [shape: f32[16,16], index: 8, kind: input, shape index: {}]   ;;  %s3689_s9 = inlined_call_operand.vmem [shape: f32[64,16], index: 9, kind: input, shape index: {}]   ;;  %s3690_s10 = inlined_call_operand.vmem [shape: f32[1,16], index: 10, kind: input, shape index: {}]   ;;  %s3691_s11 = inlined_call_operand.hbm [shape: f32[16,16], index: 11, kind: output, shape index: {}]  }
   0x1   :  { %17 = vsyncpa [#allocation6], 0 }
   0x2   :  { %18 = vsyncpa [#allocation4], 0  ;;  %s3008_s17 = smov [#allocation2]   ;;  %s2936_s21 = scalar_lea.hbm %s3681_s1, 256 }
   0x3   :  { %s26_s18 = sshll.u32 %s3008_s17, 4  ;;  %p2937_p0 = scmp.ne.s32.totalorder %s3681_s1, %s2936_s21  ;;  %s27_s18 = int_to_ptr.vmem [resolvable:$true] %s26_s18 }
   0x4   :  { %p2940_p1 = scmp.lt.u32.totalorder %s2936_s21, %s3681_s1 }
   0x6   :  { %p2942_p2 = pnand %p2940_p1, %p2937_p0 }
   0x8   :  { %2945 = shalt.err (!%p2942_p2)
}
   0x9   :  { %s2946_s26 = scalar_lea.vmem %s27_s18, 256  ;;  %p2951_p4 = scmp.lt.s32.totalorder %s27_s18, %s27_s18 }
   0xa   :  { %p2947_p3 = scmp.ne.s32.totalorder %s27_s18, %s2946_s26  ;;  %p2952_p5 = scmp.lt.s32.totalorder %s2946_s26, %s2946_s26 }
   0xc   :  { %p2953_p6 = por %p2952_p5, %p2951_p4 }
   0xe   :  { %p2954_p7 = pnand %p2953_p6, %p2947_p3 }
  0x10   :  { %2957 = shalt.err (!%p2954_p7)
}
  0x11   :  { %s3009_s27 = smov 128   ;;  %s3010_s28 = smov 8  }
  0x12   :  { %32 = dma.hbm_to_vmem [thread:$0]  %s3681_s1, 256, %s27_s18, [#allocation3], %s3009_s27, %s3009_s27, %s3010_s28  }
  0x13   :  { %s3011_s12 = smov [#allocation5]   ;;  %s2958_s16 = scalar_lea.hbm %s3688_s8, 256 }
  0x14   :  { %s50_s13 = sshll.u32 %s3011_s12, 4  ;;  %p2959_p8 = scmp.ne.s32.totalorder %s3688_s8, %s2958_s16  ;;  %s51_s13 = int_to_ptr.vmem [resolvable:$true] %s50_s13 }
  0x15   :  { %p2962_p9 = scmp.lt.u32.totalorder %s2958_s16, %s3688_s8 }
  0x17   :  { %p2964_p10 = pnand %p2962_p9, %p2959_p8 }
  0x19   :  { %2967 = shalt.err (!%p2964_p10)
}
  0x1a   :  { %s2968_s22 = scalar_lea.vmem %s51_s13, 256  ;;  %p2973_p12 = scmp.lt.s32.totalorder %s51_s13, %s51_s13 }
  0x1b   :  { %p2969_p11 = scmp.ne.s32.totalorder %s51_s13, %s2968_s22  ;;  %p2974_p13 = scmp.lt.s32.totalorder %s2968_s22, %s2968_s22 }
  0x1d   :  { %p2975_p0 = por %p2974_p13, %p2973_p12 }
  0x1f   :  { %p2976_p1 = pnand %p2975_p0, %p2969_p11 }
  0x21   :  { %2979 = shalt.err (!%p2976_p1)
}
  0x22   :  { %56 = dma.hbm_to_vmem [thread:$0]  %s3688_s8, 256, %s51_s13, [#allocation6], %s3009_s27, %s3009_s27, %s3010_s28  }
  0x23   :  { %3002 = dma.done.wait [#allocation3], 256  }
  0x24   :  { %3003 = vsyncadd [#allocation3], 4294967040 }
  0x25   :  { %3004 = dma.done.wait [#allocation6], 256  }
  0x26   :  { %3005 = vsyncadd [#allocation6], 4294967040  ;;  %v3012_v0 = vmov 0   ;;  %vm123_vm0 = vcmask 64512   ;;  %v69_v1 = vld [vmem:[#allocation2] sm:$0xff]  ;;  %v3115_v3 = vld [vmem:[%s3680_s0 + $0x8] sm:$0xff] }
  0x27   :  { %2731 = vset.pattern.permute.xlu1 %v3012_v0  ;;  %2732 = vset.pattern.permute.xlu0 %v3012_v0  ;;  %v3110_v2 = vld [vmem:[%s3680_s0] sm:$0xff]  ;;  %v106_v5 = vld [vmem:[%s3687_s7 + $0x8] sm:$0xff]  ;;  %s3013_s14 = smov 64   ;;  %s3014_s15 = smov 32   ;;  %vm305_vm1 = vcmask 130048   ;;  %vm299_vm2 = vcmask 261120  }
  0x28   :  { %2438 = vmatprep.subr.mxu0 %v69_v1  ;;  %2440 = vmatprep.mubr.msk.f32.mxu0 %vm123_vm0, %v3110_v2  ;;  %v105_v4 = vld [vmem:[%s3687_s7] sm:$0xff]  ;;  %v244_v6 = vsub.f32 1.0, %v106_v5  ;;  %s3015_s21 = smov 96   ;;  %v90_v55 = vld [vmem:[%s3684_s4 + $0x8] sm:$0xff]  ;;  %vm302_vm3 = vcmask 523264   ;;  %vm548_vm4 = vcmask 785408  }
  0x29   :  { %2439 = vmatpush3.msra.mxu0 %v69_v1  ;;  %233 = vperm.xlu1 %2731, %v105_v4   ;;  %v2303_v7 = vld [vmem:[%s3682_s2] ss:$0 sm:$0xff]  ;;  %v243_v14 = vsub.f32 1.0, %v105_v4  ;;  %v388_v56 = vsub.f32 1.0, %v90_v55 }
  0x2a   :  { %2441 = vmatmul.mubr.msk.f32.vlgmr.msra.gmra.mrb[0].mxu0 %vm123_vm0, %v3115_v3  ;;  %v89_v42 = vld [vmem:[%s3684_s4] sm:$0xff] }
  0x2b   :  { %v387_v43 = vsub.f32 1.0, %v89_v42  ;;  %v93_v52 = vld [vmem:[%s3685_s5] sm:$0xff] }
  0x2c   :  { %2447 = vmatprep.mubr.msk.f32.mxu0 %vm305_vm1, %v93_v52  ;;  %2480 = vmatprep.mubr.msk.f32.mxu1 %vm305_vm1, %v93_v52 }
  0x2d   :  { %238 = vperm.xlu1 %2731, %v106_v5  }
  0x31   :  { %252 = vperm.xlu1 %2731, %v244_v6  }
  0xa8   :  { %v234_v28 = vpop.permute.xlu1 %233 }
  0xac   :  { %v239_v30 = vpop.permute.xlu1 %238 }
  0xb0   :  { %v253_v33 = vpop.permute.xlu1 %252 }
  0xb1   :  { %v256_v35 = vmul.f32 0.0, %v253_v33 }
  0xfd   :  { %v2442_v8 = vpop.f32.mrb[0].mxu0 }
  0xfe   :  { %v196_v9 = vpop.f32.mrb[1].mxu0  ;;  %v3132_v11 = vadd.f32 %v2442_v8, %v2303_v7 }
  0xff   :  { %v3130_v10 = vadd.f32 %v2303_v7, %v196_v9  ;;  %v3185_v9 = vld [vmem:[%s3685_s5 + $0x8] sm:$0xff] }
 0x100   :  { %v206_v16 = vsub.f32 0.0, %v3132_v11 }
 0x101   :  { %2808 = vtanh.f32 %v3130_v10  ;;  %v205_v15 = vsub.f32 0.0, %v3130_v10  ;;  %v2743_v54 = vpack.i.bf16 %v3132_v11, %v3130_v10 }
 0x102   :  { %2810 = vtanh.f32 %v3132_v11  ;;  %v209_v18 = vmul.f32 1.442695, %v206_v16  ;;  %v76_v16 = vld [vmem:[%s3683_s3 + $0x18] sm:$0xff] }
 0x103   :  { %v207_v17 = vmul.f32 1.442695, %v205_v15 }
 0x105   :  { %2812 = vpow2.f32 %v207_v17 }
 0x106   :  { %2814 = vpow2.f32 %v209_v18  ;;  %v77_v18 = vld [vmem:[%s3683_s3 + $0x20] sm:$0xff] }
 0x10b   :  { %v2809_v12 = vpop.eup %2808 }
 0x10c   :  { %221 = vrot.lane.b32.xlu0 %v2809_v12, %s3013_s14  ;;  %v2811_v13 = vpop.eup %2810  ;;  %v73_v12 = vld [vmem:[%s3683_s3] sm:$0xff] }
 0x10f   :  { %v2813_v19 = vpop.eup %2812 }
 0x110   :  { %223 = vrot.lane.b32.xlu0 %v2811_v13, %s3013_s14  ;;  %v211_v20 = vadd.f32 1.0, %v2813_v19  ;;  %v2815_v21 = vpop.eup %2814  ;;  %v74_v13 = vld [vmem:[%s3683_s3 + $0x8] sm:$0xff] }
 0x111   :  { %v212_v22 = vadd.f32 1.0, %v2815_v21  ;;  %v3198_v15 = vpack.c.bf16 %v74_v13, %v73_v12  ;;  %v78_v19 = vld [vmem:[%s3683_s3 + $0x28] sm:$0xff]  ;;  %v79_v21 = vld [vmem:[%s3683_s3 + $0x30] sm:$0xff] }
 0x112   :  { %2816 = vrcp.f32 %v211_v20  ;;  %v3214_v20 = vpack.c.bf16 %v78_v19, %v77_v18  ;;  %v98_v18 = vld [vmem:[%s3686_s6 + $0x18] sm:$0xff] }
 0x113   :  { %2818 = vrcp.f32 %v212_v22  ;;  %v80_v22 = vld [vmem:[%s3683_s3 + $0x38] sm:$0xff] }
 0x114   :  { %247 = vperm.xlu0 %2732, %v243_v14   ;;  %v75_v14 = vld [vmem:[%s3683_s3 + $0x10] sm:$0xff] }
 0x115   :  { %v3203_v17 = vpack.c.bf16 %v76_v16, %v75_v14 }
 0x11c   :  { %v2817_v23 = vpop.eup %2816 }
 0x11d   :  { %v2819_v26 = vpop.eup %2818 }
 0x17e   :  { %v222_v24 = vpop.permute.xlu0 %221 }
 0x17f   :  { %v227_v25 = vmul.f32 %v2817_v23, %v222_v24 }
 0x181   :  { %2820 = vtanh.f32 %v227_v25  ;;  %v241_v37 = vmul.f32 %v234_v28, %v227_v25 }
 0x182   :  { %v224_v27 = vpop.permute.xlu0 %223 }
 0x183   :  { %v228_v29 = vmul.f32 %v2819_v26, %v224_v27 }
 0x185   :  { %2822 = vtanh.f32 %v228_v29  ;;  %v242_v34 = vmul.f32 %v239_v30, %v228_v29 }
 0x187   :  { %v3142_v39 = vadd.f32 %v256_v35, %v242_v34 }
 0x18b   :  { %v2821_v31 = vpop.eup %2820 }
 0x18c   :  { %263 = vrot.lane.b32.xlu1 %v2821_v31, %s3014_s15 }
 0x18f   :  { %v2823_v32 = vpop.eup %2822 }
 0x190   :  { %265 = vrot.lane.b32.xlu0 %v2823_v32, %s3014_s15 }
 0x193   :  { %v248_v36 = vpop.permute.xlu0 %247 }
 0x194   :  { %v255_v38 = vmul.f32 0.0, %v248_v36 }
 0x196   :  { %v3144_v40 = vadd.f32 %v255_v38, %v241_v37 }
 0x198   :  { %v2733_v41 = vpack.i.bf16 %v3142_v39, %v3144_v40 }
 0x19a   :  { %2734 = vrot.lane.b32.xlu0 %v2733_v41, %s3014_s15 }
 0x19e   :  { %403 = vperm.xlu0 %2732, %v89_v42  }
 0x1a2   :  { %391 = vperm.xlu0 %2732, %v387_v43  }
 0x1fe   :  { %v264_v44 = vpop.permute.xlu1 %263 }
 0x1ff   :  { %v269_v45 = vmul.f32 %v2817_v23, %v264_v44  ;;  %v3224_v23 = vpack.c.bf16 %v80_v22, %v79_v21 }
 0x201   :  { %v271_v47 = vmul.f32 %v269_v45, %v234_v28 }
 0x202   :  { %v266_v46 = vpop.permute.xlu0 %265 }
 0x203   :  { %v270_v48 = vmul.f32 %v2819_v26, %v266_v46  ;;  %v3152_v50 = vadd.f32 %v271_v47, %v255_v38 }
 0x205   :  { %v272_v49 = vmul.f32 %v270_v48, %v239_v30 }
 0x207   :  { %v3154_v51 = vadd.f32 %v272_v49, %v256_v35 }
 0x209   :  { %v2738_v53 = vpack.i.bf16 %v3154_v51, %v3152_v50 }
 0x20b   :  { %2739 = vrot.lane.b32.xlu1 %v2738_v53, %s3015_s21 }
 0x20c   :  { %v2735_v58 = vpop.permute.xlu0 %2734 }
 0x20d   :  { %v2737_v61 = vunpack.i.h.bf16 %v2735_v58  ;;  %v2736_v62 = vunpack.i.l.bf16 %v2735_v58  ;;  %v97_v58 = vld [vmem:[%s3686_s6 + $0x10] sm:$0xff] }
 0x20f   :  { %2744 = vrot.lane.b32.xlu1 %v2743_v54, %s3015_s21 }
 0x213   :  { %408 = vperm.xlu1 %2731, %v90_v55  }
 0x217   :  { %396 = vperm.xlu1 %2731, %v388_v56  }
 0x21d   :  { %v3231_v26 = vpop.permute.xlu0 %403 }
 0x221   :  { %v3239_v31 = vpop.permute.xlu0 %391 }
 0x27d   :  { %v2740_v57 = vpop.permute.xlu1 %2739 }
 0x27e   :  { %v2742_v59 = vunpack.i.h.bf16 %v2740_v57  ;;  %v2741_v60 = vunpack.i.l.bf16 %v2740_v57 }
 0x280   :  { %v300_v4 = vsel %vm299_vm2, %v2741_v60, %v2736_v62  ;;  %v301_v5 = vsel %vm299_vm2, %v2742_v59, %v2737_v61 }
 0x281   :  { %v3170_v63 = vpop.permute.xlu1 %2744 }
 0x282   :  { %v2747_v0 = vunpack.i.h.bf16 %v3170_v63  ;;  %v2746_v1 = vunpack.i.l.bf16 %v3170_v63 }
 0x284   :  { %v303_v6 = vsel %vm302_vm3, %v300_v4, %v2746_v1  ;;  %v304_v7 = vsel %vm302_vm3, %v301_v5, %v2747_v0 }
 0x285   :  { %v2606_v8 = vpack.c.bf16 %v304_v7, %v303_v6 }
 0x287   :  { %2607 = vmatprep.subr.bf16.mxu0 %v2606_v8 }
 0x288   :  { %2609 = vmatpush3.bf16.msra.mxu0 %v2606_v8 }
 0x289   :  { %2611 = vmatprep.subr.bf16.mxu0 %v3198_v15 }
 0x28b   :  { %2448 = vmatmul.mubr.msk.f32.vlgmr.msra.gmra.mrb[2].mxu0 %vm305_vm1, %v3185_v9 }
 0x28c   :  { %2613 = vmatpush3.bf16.msra.mxu0 %v3198_v15 }
 0x28d   :  { %2615 = vmatprep.subr.bf16.mxu0 %v3203_v17 }
 0x290   :  { %2617 = vmatpush3.bf16.msra.mxu0 %v3203_v17 }
 0x291   :  { %2619 = vmatprep.subr.bf16.mxu0 %v3214_v20 }
 0x292   :  { %v3229_v24 = vpop.permute.xlu1 %408 }
 0x294   :  { %2621 = vmatpush3.bf16.msra.mxu0 %v3214_v20 }
 0x295   :  { %2623 = vmatprep.subr.bf16.mxu0 %v3224_v23 }
 0x296   :  { %v3237_v30 = vpop.permute.xlu1 %396 }
 0x298   :  { %2625 = vmatpush3.bf16.msra.mxu0 %v3224_v23 }
 0x35e   :  { %v2449_v25 = vpop.f32.mrb[2].mxu0 }
 0x35f   :  { %v378_v27 = vpop.f32.mrb[3].mxu0  ;;  %v412_v28 = vmul.f32 %v2449_v25, %v3229_v24  ;;  %v400_v34 = vmul.f32 %v2449_v25, %v3237_v30  ;;  %v2311_v42 = vclamps-f32 %v2449_v25, 1e+14 }
 0x360   :  { %v411_v29 = vmul.f32 %v3231_v26, %v378_v27  ;;  %v399_v32 = vmul.f32 %v3239_v31, %v378_v27  ;;  %v2310_v43 = vclamps-f32 %v378_v27, 1e+14 }
 0x361   :  { %417 = vrot.lane.b32.xlu1 %v412_v28, %s3014_s15 }
 0x362   :  { %415 = vrot.lane.b32.xlu0 %v411_v29, %s3014_s15 }
 0x3d3   :  { %v418_v33 = vpop.permute.xlu1 %417 }
 0x3d4   :  { %v416_v35 = vpop.permute.xlu0 %415  ;;  %v422_v37 = vsel %vm299_vm2, %v400_v34, %v418_v33 }
 0x3d5   :  { %v421_v36 = vsel %vm299_vm2, %v399_v32, %v416_v35 }
 0x3d6   :  { %2466 = vmatprep.mubr.msk.f32.mxu0 %vm302_vm3, %v421_v36 }
 0x3d7   :  { %2467 = vmatmul.mubr.msk.f32.vlgmr.msra.gmra.mrb[4].mxu0 %vm302_vm3, %v422_v37 }
 0x3d8   :  { %2473 = vmatprep.mubr.msk.f32.mxu0 %vm305_vm1, %v97_v58 }
 0x4aa   :  { %v2468_v38 = vpop.f32.mrb[4].mxu0 }
 0x4ab   :  { %508 = vrot.lane.b32.xlu1 %v2468_v38, %s3015_s21  ;;  %v495_v41 = vpop.f32.mrb[5].mxu0 }
 0x4ac   :  { %506 = vrot.lane.b32.xlu0 %v495_v41, %s3015_s21 }
 0x4af   :  { %534 = vrot.lane.b32.xlu1 %v2311_v42, %s3014_s15 }
 0x4b0   :  { %532 = vrot.lane.b32.xlu0 %v2310_v43, %s3014_s15 }
 0x51d   :  { %v509_v44 = vpop.permute.xlu1 %508 }
 0x51e   :  { %v513_v45 = vadd.f32 %v2449_v25, %v509_v44  ;;  %v507_v46 = vpop.permute.xlu0 %506 }
 0x51f   :  { %v512_v47 = vadd.f32 %v507_v46, %v378_v27 }
 0x520   :  { %v515_v48 = vsub.f32 0.0, %v513_v45 }
 0x521   :  { %v514_v49 = vsub.f32 0.0, %v512_v47  ;;  %v535_v60 = vpop.permute.xlu1 %534 }
 0x522   :  { %v518_v52 = vmul.f32 1.442695, %v515_v48  ;;  %v533_v4 = vpop.permute.xlu0 %532 }
 0x523   :  { %v516_v53 = vmul.f32 1.442695, %v514_v49 }
 0x524   :  { %2824 = vpow2.f32 %v518_v52 }
 0x525   :  { %2826 = vpow2.f32 %v516_v53 }
 0x52e   :  { %v2825_v54 = vpop.eup %2824 }
 0x52f   :  { %v2827_v55 = vpop.eup %2826  ;;  %v521_v56 = vadd.f32 1.0, %v2825_v54 }
 0x530   :  { %v520_v57 = vadd.f32 1.0, %v2827_v55 }
 0x531   :  { %2828 = vrcp.f32 %v521_v56 }
 0x532   :  { %2830 = vrcp.f32 %v520_v57 }
 0x53b   :  { %v2829_v59 = vpop.eup %2828 }
 0x53c   :  { %v2831_v61 = vpop.eup %2830  ;;  %v539_v62 = vmul.f32 %v2829_v59, %v535_v60 }
 0x53d   :  { %v538_v5 = vmul.f32 %v2831_v61, %v533_v4 }
 0x53f   :  { %v2748_v6 = vpack.i.bf16 %v539_v62, %v538_v5 }
 0x541   :  { %2749 = vrot.lane.b32.xlu0 %v2748_v6, %s3014_s15 }
 0x5b3   :  { %v2750_v7 = vpop.permute.xlu0 %2749 }
 0x5b4   :  { %v2752_v8 = vunpack.i.h.bf16 %v2750_v7  ;;  %v2751_v12 = vunpack.i.l.bf16 %v2750_v7 }
 0x5b6   :  { %v549_v13 = vsel %vm548_vm4, %v495_v41, %v2751_v12  ;;  %v550_v14 = vsel %vm548_vm4, %v2468_v38, %v2752_v8 }
 0x5b7   :  { %v2626_v16 = vpack.c.bf16 %v550_v14, %v549_v13 }
 0x5b9   :  { %2627 = vmatprep.subr.bf16.mxu0 %v2626_v16 }
 0x5ba   :  { %2629 = vmatpush3.bf16.msra.mxu0 %v2626_v16 }
 0x5bd   :  { %2474 = vmatmul.mubr.msk.f32.vlgmr.msra.gmra.mrb[6].mxu0 %vm305_vm1, %v98_v18 }
 0x690   :  { %v2475_v19 = vpop.f32.mrb[6].mxu0 }
 0x691   :  { %v3263_v21 = vadd.f32 %v2475_v19, %v3132_v11  ;;  %638 = vrot.lane.b32.xlu0 %v2475_v19, %s3014_s15  ;;  %v623_v22 = vpop.f32.mrb[7].mxu0  ;;  %v108_v11 = vld [vmem:[%s3687_s7 + $0x18] sm:$0xff] }
 0x692   :  { %v3267_v25 = vadd.f32 %v623_v22, %v3130_v10  ;;  %636 = vrot.lane.b32.xlu1 %v623_v22, %s3014_s15  ;;  %v107_v10 = vld [vmem:[%s3687_s7 + $0x10] sm:$0xff]  ;;  %v683_v29 = vsub.f32 1.0, %v108_v11 }
 0x693   :  { %2832 = vtanh.f32 %v3263_v21  ;;  %v682_v32 = vsub.f32 1.0, %v107_v10  ;;  %v645_v33 = vsub.f32 0.0, %v3263_v21 }
 0x694   :  { %2834 = vtanh.f32 %v3267_v25  ;;  %v644_v34 = vsub.f32 0.0, %v3267_v25 }
 0x695   :  { %v648_v35 = vmul.f32 1.442695, %v645_v33 }
 0x696   :  { %v646_v36 = vmul.f32 1.442695, %v644_v34 }
 0x697   :  { %2836 = vpow2.f32 %v648_v35 }
 0x698   :  { %2838 = vpow2.f32 %v646_v36 }
 0x69d   :  { %v2833_v27 = vpop.eup %2832 }
 0x69e   :  { %v2835_v28 = vpop.eup %2834  ;;  %662 = vrot.lane.b32.xlu0 %v2833_v27, %s3013_s14 }
 0x69f   :  { %660 = vrot.lane.b32.xlu1 %v2835_v28, %s3013_s14 }
 0x6a1   :  { %v2837_v37 = vpop.eup %2836 }
 0x6a2   :  { %677 = vperm.xlu0 %2732, %v108_v11   ;;  %v2839_v38 = vpop.eup %2838  ;;  %v651_v41 = vadd.f32 1.0, %v2837_v37 }
 0x6a3   :  { %672 = vperm.xlu1 %2731, %v107_v10   ;;  %v650_v42 = vadd.f32 1.0, %v2839_v38 }
 0x6a4   :  { %2840 = vrcp.f32 %v651_v41 }
 0x6a5   :  { %2842 = vrcp.f32 %v650_v42 }
 0x6a6   :  { %691 = vperm.xlu0 %2732, %v683_v29  }
 0x6a7   :  { %686 = vperm.xlu1 %2731, %v682_v32  }
 0x6ae   :  { %v2841_v45 = vpop.eup %2840 }
 0x6af   :  { %v2843_v47 = vpop.eup %2842 }
 0x703   :  { %v639_v43 = vpop.permute.xlu0 %638 }
 0x704   :  { %v637_v44 = vpop.permute.xlu1 %636  ;;  %v643_v48 = vadd.f32 %v639_v43, %v3142_v39 }
 0x705   :  { %v642_v53 = vadd.f32 %v637_v44, %v3144_v40 }
 0x710   :  { %v663_v46 = vpop.permute.xlu0 %662 }
 0x711   :  { %v667_v49 = vmul.f32 %v2841_v45, %v663_v46  ;;  %v661_v52 = vpop.permute.xlu1 %660 }
 0x712   :  { %v666_v54 = vmul.f32 %v2843_v47, %v661_v52 }
 0x713   :  { %v669_v55 = vadd.f32 %v667_v49, %v643_v48 }
 0x714   :  { %v668_v56 = vadd.f32 %v666_v54, %v642_v53 }
 0x715   :  { %2844 = vtanh.f32 %v669_v55 }
 0x716   :  { %2846 = vtanh.f32 %v668_v56 }
 0x71f   :  { %v2845_v57 = vpop.eup %2844 }
 0x720   :  { %v2847_v58 = vpop.eup %2846  ;;  %704 = vrot.lane.b32.xlu0 %v2845_v57, %s3014_s15 }
 0x721   :  { %v678_v59 = vpop.permute.xlu0 %677  ;;  %702 = vrot.lane.b32.xlu1 %v2847_v58, %s3014_s15  ;;  %v99_v58 = vld [vmem:[%s3686_s6 + $0x20] sm:$0xff] }
 0x722   :  { %v673_v60 = vpop.permute.xlu1 %672  ;;  %v681_v62 = vmul.f32 %v678_v59, %v669_v55  ;;  %2506 = vmatprep.mubr.msk.f32.mxu0 %vm305_vm1, %v99_v58 }
 0x723   :  { %v680_v5 = vmul.f32 %v673_v60, %v668_v56 }
 0x725   :  { %v692_v61 = vpop.permute.xlu0 %691 }
 0x726   :  { %v695_v39 = vmul.f32 %v692_v61, %v643_v48  ;;  %v687_v4 = vpop.permute.xlu1 %686  ;;  %v713_v18 = vmul.f32 %v692_v61, %v3154_v51 }
 0x727   :  { %v694_v6 = vmul.f32 %v687_v4, %v642_v53  ;;  %v712_v22 = vmul.f32 %v687_v4, %v3152_v50 }
 0x728   :  { %v3286_v40 = vadd.f32 %v695_v39, %v681_v62 }
 0x729   :  { %v3288_v7 = vadd.f32 %v694_v6, %v680_v5 }
 0x72b   :  { %v2758_v8 = vpack.i.bf16 %v3286_v40, %v3288_v7 }
 0x72d   :  { %2759 = vrot.lane.b32.xlu0 %v2758_v8, %s3014_s15 }
 0x792   :  { %v705_v12 = vpop.permute.xlu0 %704 }
 0x793   :  { %v709_v13 = vmul.f32 %v2841_v45, %v705_v12  ;;  %v703_v14 = vpop.permute.xlu1 %702 }
 0x794   :  { %v708_v16 = vmul.f32 %v2843_v47, %v703_v14 }
 0x795   :  { %v711_v19 = vmul.f32 %v709_v13, %v678_v59 }
 0x796   :  { %v710_v27 = vmul.f32 %v708_v16, %v673_v60 }
 0x797   :  { %v3295_v28 = vadd.f32 %v713_v18, %v711_v19  ;;  %v70_v18 = vld [vmem:[#allocation2 + $0x8] sm:$0xff] }
 0x798   :  { %v3297_v11 = vadd.f32 %v712_v22, %v710_v27  ;;  %v100_v19 = vld [vmem:[%s3686_s6 + $0x28] sm:$0xff] }
 0x79a   :  { %v2753_v10 = vpack.i.bf16 %v3295_v28, %v3297_v11 }
 0x79c   :  { %2754 = vrot.lane.b32.xlu1 %v2753_v10, %s3015_s21  ;;  %v2322_v10 = vld [vmem:[%s3682_s2 + $0x1] ss:$0 sm:$0xff] }
 0x79f   :  { %v2760_v29 = vpop.permute.xlu0 %2759 }
 0x7a0   :  { %v2762_v33 = vunpack.i.h.bf16 %v2760_v29  ;;  %v2761_v34 = vunpack.i.l.bf16 %v2760_v29 }
 0x80e   :  { %v2755_v32 = vpop.permute.xlu1 %2754 }
 0x80f   :  { %v2757_v35 = vunpack.i.h.bf16 %v2755_v32  ;;  %v2756_v36 = vunpack.i.l.bf16 %v2755_v32 }
 0x811   :  { %v732_v51 = vsel %vm299_vm2, %v2756_v36, %v2761_v34  ;;  %v733_v50 = vsel %vm299_vm2, %v2757_v35, %v2762_v33  ;;  %v112_v35 = vld [vmem:[%s3687_s7 + $0x38] sm:$0xff]  ;;  %v111_v36 = vld [vmem:[%s3687_s7 + $0x30] sm:$0xff] }
 0x812   :  { %v734_v37 = vsel %vm302_vm3, %v732_v51, %v2746_v1  ;;  %v735_v38 = vsel %vm302_vm3, %v733_v50, %v2747_v0  ;;  %v1231_v51 = vsub.f32 1.0, %v112_v35  ;;  %v1230_v50 = vsub.f32 1.0, %v111_v36 }
 0x813   :  { %v2630_v41 = vpack.c.bf16 %v735_v38, %v734_v37 }
 0x815   :  { %2631 = vmatprep.subr.bf16.mxu1 %v2630_v41 }
 0x816   :  { %2633 = vmatpush3.bf16.msra.mxu1 %v2630_v41 }
 0x817   :  { %2635 = vmatprep.subr.bf16.mxu1 %v3198_v15 }
 0x819   :  { %2481 = vmatmul.mubr.msk.f32.vlgmr.msra.gmra.mrb[0].mxu1 %vm305_vm1, %v3185_v9 }
 0x81a   :  { %2637 = vmatpush3.bf16.msra.mxu1 %v3198_v15 }
 0x81b   :  { %2639 = vmatprep.subr.bf16.mxu1 %v3203_v17 }
 0x81e   :  { %2641 = vmatpush3.bf16.msra.mxu1 %v3203_v17 }
 0x81f   :  { %2643 = vmatprep.subr.bf16.mxu1 %v3214_v20 }
 0x822   :  { %2645 = vmatpush3.bf16.msra.mxu1 %v3214_v20 }
 0x823   :  { %2647 = vmatprep.subr.bf16.mxu1 %v3224_v23 }
 0x826   :  { %2649 = vmatpush3.bf16.msra.mxu1 %v3224_v23 }
 0x8ec   :  { %v2482_v63 = vpop.f32.mrb[0].mxu1 }
 0x8ed   :  { %v802_v0 = vpop.f32.mrb[1].mxu1  ;;  %v814_v1 = vmul.f32 %v2482_v63, %v3229_v24  ;;  %v812_v42 = vmul.f32 %v2482_v63, %v3237_v30  ;;  %v2319_v44 = vclamps-f32 %v2482_v63, 1e+14 }
 0x8ee   :  { %v813_v9 = vmul.f32 %v802_v0, %v3231_v26  ;;  %v811_v15 = vmul.f32 %v802_v0, %v3239_v31  ;;  %v2318_v31 = vclamps-f32 %v802_v0, 1e+14 }
 0x8ef   :  { %819 = vrot.lane.b32.xlu0 %v814_v1, %s3014_s15 }
 0x8f0   :  { %817 = vrot.lane.b32.xlu1 %v813_v9, %s3014_s15 }
 0x961   :  { %v820_v17 = vpop.permute.xlu0 %819 }
 0x962   :  { %v818_v20 = vpop.permute.xlu1 %817  ;;  %v824_v23 = vsel %vm299_vm2, %v812_v42, %v820_v17 }
 0x963   :  { %v823_v43 = vsel %vm299_vm2, %v811_v15, %v818_v20 }
 0x964   :  { %2499 = vmatprep.mubr.msk.f32.mxu1 %vm302_vm3, %v823_v43 }
 0x965   :  { %2500 = vmatmul.mubr.msk.f32.vlgmr.msra.gmra.mrb[2].mxu1 %vm302_vm3, %v824_v23 }
 0xa38   :  { %v2501_v24 = vpop.f32.mrb[2].mxu1 }
 0xa39   :  { %910 = vrot.lane.b32.xlu0 %v2501_v24, %s3015_s21  ;;  %v897_v26 = vpop.f32.mrb[3].mxu1 }
 0xa3a   :  { %908 = vrot.lane.b32.xlu1 %v897_v26, %s3015_s21 }
 0xa3d   :  { %936 = vrot.lane.b32.xlu0 %v2319_v44, %s3014_s15 }
 0xa3e   :  { %934 = vrot.lane.b32.xlu1 %v2318_v31, %s3014_s15 }
 0xaab   :  { %v911_v30 = vpop.permute.xlu0 %910 }
 0xaac   :  { %v915_v45 = vadd.f32 %v2482_v63, %v911_v30  ;;  %v909_v46 = vpop.permute.xlu1 %908 }
 0xaad   :  { %v914_v47 = vadd.f32 %v909_v46, %v802_v0 }
 0xaae   :  { %v917_v48 = vsub.f32 0.0, %v915_v45 }
 0xaaf   :  { %v916_v49 = vsub.f32 0.0, %v914_v47  ;;  %v937_v60 = vpop.permute.xlu0 %936 }
 0xab0   :  { %v920_v52 = vmul.f32 1.442695, %v917_v48  ;;  %v935_v39 = vpop.permute.xlu1 %934 }
 0xab1   :  { %v918_v53 = vmul.f32 1.442695, %v916_v49 }
 0xab2   :  { %2848 = vpow2.f32 %v920_v52 }
 0xab3   :  { %2850 = vpow2.f32 %v918_v53 }
 0xabc   :  { %v2849_v54 = vpop.eup %2848 }
 0xabd   :  { %v2851_v55 = vpop.eup %2850  ;;  %v923_v56 = vadd.f32 1.0, %v2849_v54 }
 0xabe   :  { %v922_v57 = vadd.f32 1.0, %v2851_v55 }
 0xabf   :  { %2852 = vrcp.f32 %v923_v56  ;;  %v91_v56 = vld [vmem:[%s3684_s4 + $0x10] sm:$0xff] }
 0xac0   :  { %2854 = vrcp.f32 %v922_v57  ;;  %v1371_v57 = vsub.f32 1.0, %v91_v56 }
 0xac9   :  { %v2853_v59 = vpop.eup %2852 }
 0xaca   :  { %v2855_v61 = vpop.eup %2854  ;;  %v941_v62 = vmul.f32 %v2853_v59, %v937_v60 }
 0xacb   :  { %v940_v4 = vmul.f32 %v2855_v61, %v935_v39 }
 0xacd   :  { %v2763_v5 = vpack.i.bf16 %v941_v62, %v940_v4 }
 0xacf   :  { %2764 = vrot.lane.b32.xlu1 %v2763_v5, %s3014_s15 }
 0xb41   :  { %v2765_v6 = vpop.permute.xlu1 %2764 }
 0xb42   :  { %v2767_v8 = vunpack.i.h.bf16 %v2765_v6  ;;  %v2766_v12 = vunpack.i.l.bf16 %v2765_v6  ;;  %v3391_v6 = vld [vmem:[%s3685_s5 + $0x10] sm:$0xff] }
 0xb44   :  { %v950_v13 = vsel %vm548_vm4, %v897_v26, %v2766_v12  ;;  %v951_v14 = vsel %vm548_vm4, %v2501_v24, %v2767_v8 }
 0xb45   :  { %v2650_v16 = vpack.c.bf16 %v951_v14, %v950_v13  ;;  %v92_v13 = vld [vmem:[%s3684_s4 + $0x18] sm:$0xff] }
 0xb46   :  { %v1372_v14 = vsub.f32 1.0, %v92_v13 }
 0xb47   :  { %2651 = vmatprep.subr.bf16.mxu0 %v2650_v16 }
 0xb48   :  { %2653 = vmatpush3.bf16.msra.mxu0 %v2650_v16 }
 0xb49   :  { %2509 = vmatprep.subr.mxu0 %v70_v18 }
 0xb4b   :  { %2507 = vmatmul.mubr.msk.f32.vlgmr.msra.gmra.mrb[8].mxu0 %vm305_vm1, %v100_v19 }
 0xb4c   :  { %2510 = vmatpush3.msra.mxu0 %v70_v18  ;;  %2511 = vmatprep.mubr.msk.f32.mxu0 %vm123_vm0, %v3110_v2 }
 0xb4f   :  { %2512 = vmatmul.mubr.msk.f32.vlgmr.msra.gmra.mrb[10].mxu0 %vm123_vm0, %v3115_v3 }
 0xb50   :  { %2518 = vmatprep.mubr.msk.f32.mxu0 %vm305_vm1, %v3391_v6 }
 0xc1e   :  { %v3349_v22 = vpop.f32.mrb[8].mxu0 }
 0xc1f   :  { %v3351_v27 = vpop.f32.mrb[9].mxu0 }
 0xc22   :  { %v2513_v29 = vpop.f32.mrb[10].mxu0 }
 0xc23   :  { %v3356_v32 = vadd.f32 %v2513_v29, %v2322_v10  ;;  %v1183_v33 = vpop.f32.mrb[11].mxu0 }
 0xc24   :  { %v3358_v34 = vadd.f32 %v2322_v10, %v1183_v33 }
 0xc25   :  { %2856 = vtanh.f32 %v3356_v32  ;;  %v1193_v37 = vsub.f32 0.0, %v3356_v32 }
 0xc26   :  { %2858 = vtanh.f32 %v3358_v34  ;;  %v1192_v38 = vsub.f32 0.0, %v3358_v34  ;;  %v2778_v12 = vpack.i.bf16 %v3356_v32, %v3358_v34 }
 0xc27   :  { %v1196_v41 = vmul.f32 1.442695, %v1193_v37 }
 0xc28   :  { %v1194_v63 = vmul.f32 1.442695, %v1192_v38 }
 0xc29   :  { %2860 = vpow2.f32 %v1196_v41  ;;  %v3419_v41 = vld [vmem:[%s3685_s5 + $0x18] sm:$0xff] }
 0xc2a   :  { %2862 = vpow2.f32 %v1194_v63  ;;  %v81_v63 = vld [vmem:[%s3683_s3 + $0x40] sm:$0xff] }
 0xc2f   :  { %v2857_v2 = vpop.eup %2856 }
 0xc30   :  { %v2859_v3 = vpop.eup %2858  ;;  %1210 = vrot.lane.b32.xlu1 %v2857_v2, %s3013_s14 }
 0xc31   :  { %1208 = vrot.lane.b32.xlu0 %v2859_v3, %s3013_s14 }
 0xc33   :  { %v2861_v0 = vpop.eup %2860 }
 0xc34   :  { %1225 = vperm.xlu1 %2731, %v112_v35   ;;  %v2863_v1 = vpop.eup %2862  ;;  %v1199_v9 = vadd.f32 1.0, %v2861_v0  ;;  %v82_v0 = vld [vmem:[%s3683_s3 + $0x48] sm:$0xff] }
 0xc35   :  { %1220 = vperm.xlu0 %2732, %v111_v36   ;;  %v1198_v15 = vadd.f32 1.0, %v2863_v1  ;;  %v83_v1 = vld [vmem:[%s3683_s3 + $0x50] sm:$0xff] }
 0xc36   :  { %2864 = vrcp.f32 %v1199_v9  ;;  %v3432_v9 = vpack.c.bf16 %v82_v0, %v81_v63 }
 0xc37   :  { %2866 = vrcp.f32 %v1198_v15  ;;  %v84_v15 = vld [vmem:[%s3683_s3 + $0x58] sm:$0xff] }
 0xc38   :  { %1239 = vperm.xlu1 %2731, %v1231_v51   ;;  %2659 = vmatprep.subr.bf16.mxu1 %v3432_v9 }
 0xc39   :  { %1234 = vperm.xlu0 %2732, %v1230_v50   ;;  %2661 = vmatpush3.bf16.msra.mxu1 %v3432_v9 }
 0xc40   :  { %v2865_v17 = vpop.eup %2864 }
 0xc41   :  { %v2867_v20 = vpop.eup %2866 }
 0xca2   :  { %v1211_v42 = vpop.permute.xlu1 %1210 }
 0xca3   :  { %v1215_v43 = vmul.f32 %v2865_v17, %v1211_v42  ;;  %v1209_v23 = vpop.permute.xlu0 %1208  ;;  %v85_v42 = vld [vmem:[%s3683_s3 + $0x60] sm:$0xff] }
 0xca4   :  { %v1214_v24 = vmul.f32 %v2867_v20, %v1209_v23  ;;  %v87_v23 = vld [vmem:[%s3683_s3 + $0x70] sm:$0xff] }
 0xca5   :  { %2868 = vtanh.f32 %v1215_v43 }
 0xca6   :  { %2870 = vtanh.f32 %v1214_v24 }
 0xcaf   :  { %v2869_v26 = vpop.eup %2868 }
 0xcb0   :  { %v2871_v44 = vpop.eup %2870  ;;  %1252 = vrot.lane.b32.xlu1 %v2869_v26, %s3014_s15 }
 0xcb1   :  { %1250 = vrot.lane.b32.xlu0 %v2871_v44, %s3014_s15 }
 0xcb3   :  { %v1226_v31 = vpop.permute.xlu1 %1225 }
 0xcb4   :  { %v1221_v30 = vpop.permute.xlu0 %1220  ;;  %v1229_v46 = vmul.f32 %v1226_v31, %v1215_v43 }
 0xcb5   :  { %v1228_v49 = vmul.f32 %v1221_v30, %v1214_v24  ;;  %v88_v24 = vld [vmem:[%s3683_s3 + $0x78] sm:$0xff] }
 0xcb6   :  { %v3458_v26 = vpack.c.bf16 %v88_v24, %v87_v23 }
 0xcb7   :  { %v1240_v45 = vpop.permute.xlu1 %1239 }
 0xcb8   :  { %v1243_v47 = vmul.f32 0.0, %v1240_v45  ;;  %v1235_v48 = vpop.permute.xlu0 %1234 }
 0xcb9   :  { %v1242_v52 = vmul.f32 0.0, %v1235_v48 }
 0xcba   :  { %v3374_v53 = vadd.f32 %v1243_v47, %v1229_v46 }
 0xcbb   :  { %v3376_v54 = vadd.f32 %v1242_v52, %v1228_v49 }
 0xcbd   :  { %v2768_v55 = vpack.i.bf16 %v3374_v53, %v3376_v54 }
 0xcbf   :  { %2769 = vrot.lane.b32.xlu1 %v2768_v55, %s3014_s15 }
 0xcc3   :  { %1387 = vperm.xlu1 %2731, %v91_v56  }
 0xcc7   :  { %1375 = vperm.xlu1 %2731, %v1371_v57  }
 0xd22   :  { %v1253_v58 = vpop.permute.xlu1 %1252 }
 0xd23   :  { %v1257_v59 = vmul.f32 %v2865_v17, %v1253_v58  ;;  %v1251_v60 = vpop.permute.xlu0 %1250  ;;  %v3437_v17 = vpack.c.bf16 %v84_v15, %v83_v1 }
 0xd24   :  { %v1256_v61 = vmul.f32 %v2867_v20, %v1251_v60  ;;  %v86_v20 = vld [vmem:[%s3683_s3 + $0x68] sm:$0xff] }
 0xd25   :  { %v1259_v62 = vmul.f32 %v1257_v59, %v1226_v31  ;;  %2663 = vmatprep.subr.bf16.mxu1 %v3437_v17  ;;  %v3448_v43 = vpack.c.bf16 %v86_v20, %v85_v42 }
 0xd26   :  { %v1258_v39 = vmul.f32 %v1256_v61, %v1221_v30  ;;  %2665 = vmatpush3.bf16.msra.mxu1 %v3437_v17 }
 0xd27   :  { %v3384_v4 = vadd.f32 %v1259_v62, %v1243_v47  ;;  %2667 = vmatprep.subr.bf16.mxu1 %v3448_v43 }
 0xd28   :  { %v3386_v5 = vadd.f32 %v1258_v39, %v1242_v52 }
 0xd2a   :  { %v2773_v8 = vpack.i.bf16 %v3384_v4, %v3386_v5  ;;  %2669 = vmatpush3.bf16.msra.mxu1 %v3448_v43 }
 0xd2b   :  { %2671 = vmatprep.subr.bf16.mxu1 %v3458_v26 }
 0xd2c   :  { %2774 = vrot.lane.b32.xlu0 %v2773_v8, %s3015_s21 }
 0xd2e   :  { %2673 = vmatpush3.bf16.msra.mxu1 %v3458_v26 }
 0xd30   :  { %2779 = vrot.lane.b32.xlu0 %v2778_v12, %s3015_s21 }
 0xd31   :  { %v2770_v18 = vpop.permute.xlu1 %2769 }
 0xd32   :  { %v2772_v29 = vunpack.i.h.bf16 %v2770_v18  ;;  %v2771_v33 = vunpack.i.l.bf16 %v2770_v18 }
 0xd34   :  { %1392 = vperm.xlu0 %2732, %v92_v13  }
 0xd38   :  { %1380 = vperm.xlu0 %2732, %v1372_v14  }
 0xd42   :  { %v3465_v30 = vpop.permute.xlu1 %1387 }
 0xd46   :  { %v3473_v49 = vpop.permute.xlu1 %1375 }
 0xd9e   :  { %v2775_v16 = vpop.permute.xlu0 %2774 }
 0xd9f   :  { %v2777_v19 = vunpack.i.h.bf16 %v2775_v16  ;;  %v2776_v10 = vunpack.i.l.bf16 %v2775_v16 }
 0xda1   :  { %v1286_v36 = vsel %vm299_vm2, %v2776_v10, %v2771_v33  ;;  %v1287_v51 = vsel %vm299_vm2, %v2777_v19, %v2772_v29 }
 0xda2   :  { %v3404_v2 = vpop.permute.xlu0 %2779 }
 0xda3   :  { %v2782_v3 = vunpack.i.h.bf16 %v3404_v2  ;;  %v2781_v35 = vunpack.i.l.bf16 %v3404_v2 }
 0xda5   :  { %v1288_v50 = vsel %vm302_vm3, %v1286_v36, %v2781_v35  ;;  %v1289_v37 = vsel %vm302_vm3, %v1287_v51, %v2782_v3 }
 0xda6   :  { %v2654_v38 = vpack.c.bf16 %v1289_v37, %v1288_v50  ;;  %v101_v50 = vld [vmem:[%s3686_s6 + $0x40] sm:$0xff] }
 0xda8   :  { %2655 = vmatprep.subr.bf16.mxu0 %v2654_v38 }
 0xda9   :  { %2657 = vmatpush3.bf16.msra.mxu0 %v2654_v38 }
 0xdac   :  { %2519 = vmatmul.mubr.msk.f32.vlgmr.msra.gmra.mrb[12].mxu0 %vm305_vm1, %v3419_v41 }
 0xdad   :  { %2544 = vmatprep.mubr.msk.f32.mxu0 %vm305_vm1, %v101_v50 }
 0xdb3   :  { %v3463_v44 = vpop.permute.xlu0 %1392 }
 0xdb7   :  { %v3471_v48 = vpop.permute.xlu0 %1380 }
 0xe7f   :  { %v2520_v31 = vpop.f32.mrb[12].mxu0 }
 0xe80   :  { %v1362_v45 = vpop.f32.mrb[13].mxu0  ;;  %v1396_v46 = vmul.f32 %v2520_v31, %v3463_v44  ;;  %v1384_v56 = vmul.f32 %v2520_v31, %v3471_v48  ;;  %v2330_v62 = vclamps-f32 %v2520_v31, 1e+14 }
 0xe81   :  { %v1395_v47 = vmul.f32 %v3465_v30, %v1362_v45  ;;  %v1383_v52 = vmul.f32 %v3473_v49, %v1362_v45  ;;  %v2329_v39 = vclamps-f32 %v1362_v45, 1e+14 }
 0xe82   :  { %1401 = vrot.lane.b32.xlu0 %v1396_v46, %s3014_s15 }
 0xe83   :  { %1399 = vrot.lane.b32.xlu1 %v1395_v47, %s3014_s15  ;;  %v102_v47 = vld [vmem:[%s3686_s6 + $0x48] sm:$0xff] }
 0xef4   :  { %v1402_v55 = vpop.permute.xlu0 %1401 }
 0xef5   :  { %v1400_v57 = vpop.permute.xlu1 %1399  ;;  %v1406_v59 = vsel %vm299_vm2, %v1384_v56, %v1402_v55 }
 0xef6   :  { %v1405_v58 = vsel %vm299_vm2, %v1383_v52, %v1400_v57 }
 0xef7   :  { %2537 = vmatprep.mubr.msk.f32.mxu1 %vm302_vm3, %v1405_v58 }
 0xef8   :  { %2538 = vmatmul.mubr.msk.f32.vlgmr.msra.gmra.mrb[4].mxu1 %vm302_vm3, %v1406_v59 }
 0xfcb   :  { %v2539_v60 = vpop.f32.mrb[4].mxu1 }
 0xfcc   :  { %1492 = vrot.lane.b32.xlu0 %v2539_v60, %s3015_s21  ;;  %v1479_v61 = vpop.f32.mrb[5].mxu1 }
 0xfcd   :  { %1490 = vrot.lane.b32.xlu1 %v1479_v61, %s3015_s21 }
 0xfd0   :  { %1518 = vrot.lane.b32.xlu0 %v2330_v62, %s3014_s15 }
 0xfd1   :  { %1516 = vrot.lane.b32.xlu1 %v2329_v39, %s3014_s15 }
0x103e   :  { %v1493_v8 = vpop.permute.xlu0 %1492 }
0x103f   :  { %v1497_v12 = vadd.f32 %v2520_v31, %v1493_v8  ;;  %v1491_v13 = vpop.permute.xlu1 %1490 }
0x1040   :  { %v1496_v14 = vadd.f32 %v1491_v13, %v1362_v45 }
0x1041   :  { %v1499_v16 = vsub.f32 0.0, %v1497_v12 }
0x1042   :  { %v1498_v18 = vsub.f32 0.0, %v1496_v14  ;;  %v1519_v38 = vpop.permute.xlu0 %1518 }
0x1043   :  { %v1502_v19 = vmul.f32 1.442695, %v1499_v16  ;;  %v1517_v1 = vpop.permute.xlu1 %1516 }
0x1044   :  { %v1500_v10 = vmul.f32 1.442695, %v1498_v18 }
0x1045   :  { %2872 = vpow2.f32 %v1502_v19 }
0x1046   :  { %2874 = vpow2.f32 %v1500_v10 }
0x104f   :  { %v2873_v29 = vpop.eup %2872 }
0x1050   :  { %v2875_v33 = vpop.eup %2874  ;;  %v1505_v36 = vadd.f32 1.0, %v2873_v29 }
0x1051   :  { %v1504_v51 = vadd.f32 1.0, %v2875_v33 }
0x1052   :  { %2876 = vrcp.f32 %v1505_v36 }
0x1053   :  { %2878 = vrcp.f32 %v1504_v51 }
0x105c   :  { %v2877_v37 = vpop.eup %2876 }
0x105d   :  { %v2879_v63 = vpop.eup %2878  ;;  %v1523_v0 = vmul.f32 %v2877_v37, %v1519_v38 }
0x105e   :  { %v1522_v15 = vmul.f32 %v2879_v63, %v1517_v1 }
0x1060   :  { %v2783_v42 = vpack.i.bf16 %v1523_v0, %v1522_v15 }
0x1062   :  { %2784 = vrot.lane.b32.xlu1 %v2783_v42, %s3014_s15 }
0x10d4   :  { %v2785_v20 = vpop.permute.xlu1 %2784 }
0x10d5   :  { %v2787_v23 = vunpack.i.h.bf16 %v2785_v20  ;;  %v2786_v24 = vunpack.i.l.bf16 %v2785_v20 }
0x10d7   :  { %v1532_v31 = vsel %vm548_vm4, %v1479_v61, %v2786_v24  ;;  %v1533_v45 = vsel %vm548_vm4, %v2539_v60, %v2787_v23 }
0x10d8   :  { %v2674_v46 = vpack.c.bf16 %v1533_v45, %v1532_v31 }
0x10da   :  { %2675 = vmatprep.subr.bf16.mxu0 %v2674_v46 }
0x10db   :  { %2677 = vmatpush3.bf16.msra.mxu0 %v2674_v46 }
0x10de   :  { %2545 = vmatmul.mubr.msk.f32.vlgmr.msra.gmra.mrb[14].mxu0 %vm305_vm1, %v102_v47 }
0x10df   :  { %2551 = vmatprep.mubr.msk.f32.mxu0 %vm305_vm1, %v3391_v6 }
0x11b1   :  { %v2546_v52 = vpop.f32.mrb[14].mxu0 }
0x11b2   :  { %v3499_v55 = vadd.f32 %v2546_v52, %v3356_v32  ;;  %1621 = vrot.lane.b32.xlu1 %v2546_v52, %s3014_s15  ;;  %v1606_v56 = vpop.f32.mrb[15].mxu0  ;;  %v114_v32 = vld [vmem:[%s3687_s7 + $0x48] sm:$0xff] }
0x11b3   :  { %v3503_v57 = vadd.f32 %v1606_v56, %v3358_v34  ;;  %1619 = vrot.lane.b32.xlu0 %v1606_v56, %s3014_s15  ;;  %v113_v34 = vld [vmem:[%s3687_s7 + $0x40] sm:$0xff]  ;;  %v1666_v6 = vsub.f32 1.0, %v114_v32 }
0x11b4   :  { %2880 = vtanh.f32 %v3499_v55  ;;  %v1665_v60 = vsub.f32 1.0, %v113_v34  ;;  %v1628_v61 = vsub.f32 0.0, %v3499_v55 }
0x11b5   :  { %2882 = vtanh.f32 %v3503_v57  ;;  %v1627_v62 = vsub.f32 0.0, %v3503_v57 }
0x11b6   :  { %v1631_v39 = vmul.f32 1.442695, %v1628_v61 }
0x11b7   :  { %v1629_v8 = vmul.f32 1.442695, %v1627_v62 }
0x11b8   :  { %2884 = vpow2.f32 %v1631_v39 }
0x11b9   :  { %2886 = vpow2.f32 %v1629_v8 }
0x11be   :  { %v2881_v58 = vpop.eup %2880 }
0x11bf   :  { %v2883_v59 = vpop.eup %2882  ;;  %1645 = vrot.lane.b32.xlu1 %v2881_v58, %s3013_s14 }
0x11c0   :  { %1643 = vrot.lane.b32.xlu0 %v2883_v59, %s3013_s14 }
0x11c2   :  { %v2885_v12 = vpop.eup %2884 }
0x11c3   :  { %1660 = vperm.xlu1 %2731, %v114_v32   ;;  %v2887_v13 = vpop.eup %2886  ;;  %v1634_v14 = vadd.f32 1.0, %v2885_v12 }
0x11c4   :  { %1655 = vperm.xlu0 %2732, %v113_v34   ;;  %v1633_v16 = vadd.f32 1.0, %v2887_v13 }
0x11c5   :  { %2888 = vrcp.f32 %v1634_v14 }
0x11c6   :  { %2890 = vrcp.f32 %v1633_v16 }
0x11c7   :  { %1674 = vperm.xlu1 %2731, %v1666_v6  }
0x11c8   :  { %1669 = vperm.xlu0 %2732, %v1665_v60  }
0x11cf   :  { %v2889_v10 = vpop.eup %2888 }
0x11d0   :  { %v2891_v33 = vpop.eup %2890 }
0x1224   :  { %v1622_v18 = vpop.permute.xlu1 %1621 }
0x1225   :  { %v1620_v19 = vpop.permute.xlu0 %1619  ;;  %v1626_v36 = vadd.f32 %v1622_v18, %v3374_v53 }
0x1226   :  { %v1625_v37 = vadd.f32 %v1620_v19, %v3376_v54 }
0x1231   :  { %v1646_v29 = vpop.permute.xlu1 %1645 }
0x1232   :  { %v1650_v51 = vmul.f32 %v2889_v10, %v1646_v29  ;;  %v1644_v50 = vpop.permute.xlu0 %1643 }
0x1233   :  { %v1649_v38 = vmul.f32 %v2891_v33, %v1644_v50 }
0x1234   :  { %v1652_v63 = vadd.f32 %v1650_v51, %v1626_v36 }
0x1235   :  { %v1651_v0 = vadd.f32 %v1649_v38, %v1625_v37 }
0x1236   :  { %2892 = vtanh.f32 %v1652_v63 }
0x1237   :  { %2894 = vtanh.f32 %v1651_v0 }
0x1240   :  { %v2893_v1 = vpop.eup %2892 }
0x1241   :  { %v2895_v15 = vpop.eup %2894  ;;  %1687 = vrot.lane.b32.xlu1 %v2893_v1, %s3014_s15 }
0x1242   :  { %v1661_v42 = vpop.permute.xlu1 %1660  ;;  %1685 = vrot.lane.b32.xlu0 %v2895_v15, %s3014_s15 }
0x1243   :  { %v1656_v20 = vpop.permute.xlu0 %1655  ;;  %v1664_v24 = vmul.f32 %v1661_v42, %v1652_v63 }
0x1244   :  { %v1663_v45 = vmul.f32 %v1656_v20, %v1651_v0 }
0x1246   :  { %v1675_v23 = vpop.permute.xlu1 %1674 }
0x1247   :  { %v1678_v53 = vmul.f32 %v1675_v23, %v1626_v36  ;;  %v1670_v31 = vpop.permute.xlu0 %1669  ;;  %v1696_v34 = vmul.f32 %v1675_v23, %v3384_v4 }
0x1248   :  { %v1677_v46 = vmul.f32 %v1670_v31, %v1625_v37  ;;  %v1695_v60 = vmul.f32 %v1670_v31, %v3386_v5 }
0x1249   :  { %v3522_v54 = vadd.f32 %v1678_v53, %v1664_v24 }
0x124a   :  { %v3524_v47 = vadd.f32 %v1677_v46, %v1663_v45 }
0x124c   :  { %v2793_v52 = vpack.i.bf16 %v3522_v54, %v3524_v47 }
0x124e   :  { %2794 = vrot.lane.b32.xlu1 %v2793_v52, %s3014_s15  ;;  %v103_v52 = vld [vmem:[%s3686_s6 + $0x50] sm:$0xff] }
0x124f   :  { %2577 = vmatprep.mubr.msk.f32.mxu1 %vm305_vm1, %v103_v52 }
0x12b3   :  { %v1688_v56 = vpop.permute.xlu1 %1687 }
0x12b4   :  { %v1692_v58 = vmul.f32 %v2889_v10, %v1688_v56  ;;  %v1686_v59 = vpop.permute.xlu0 %1685 }
0x12b5   :  { %v1691_v32 = vmul.f32 %v2891_v33, %v1686_v59 }
0x12b6   :  { %v1694_v6 = vmul.f32 %v1692_v58, %v1661_v42 }
0x12b7   :  { %v1693_v61 = vmul.f32 %v1691_v32, %v1656_v20 }
0x12b8   :  { %v3531_v62 = vadd.f32 %v1696_v34, %v1694_v6 }
0x12b9   :  { %v3533_v39 = vadd.f32 %v1695_v60, %v1693_v61 }
0x12bb   :  { %v2788_v8 = vpack.i.bf16 %v3531_v62, %v3533_v39 }
0x12bd   :  { %2789 = vrot.lane.b32.xlu0 %v2788_v8, %s3015_s21 }
0x12c0   :  { %v2795_v12 = vpop.permute.xlu1 %2794 }
0x12c1   :  { %v2797_v14 = vunpack.i.h.bf16 %v2795_v12  ;;  %v2796_v16 = vunpack.i.l.bf16 %v2795_v12 }
0x132f   :  { %v2790_v13 = vpop.permute.xlu0 %2789 }
0x1330   :  { %v2792_v18 = vunpack.i.h.bf16 %v2790_v13  ;;  %v2791_v19 = vunpack.i.l.bf16 %v2790_v13 }
0x1332   :  { %v1715_v4 = vsel %vm299_vm2, %v2791_v19, %v2796_v16  ;;  %v1716_v5 = vsel %vm299_vm2, %v2792_v18, %v2797_v14  ;;  %v104_v14 = vld [vmem:[%s3686_s6 + $0x58] sm:$0xff]  ;;  %s3016_s6 = smov [#allocation7]  }
0x1333   :  { %v1717_v10 = vsel %vm302_vm3, %v1715_v4, %v2781_v35  ;;  %v1718_v29 = vsel %vm302_vm3, %v1716_v5, %v2782_v3  ;;  %s2290_s5 = sshll.u32 %s3016_s6, 4  ;;  %s2291_s5 = int_to_ptr.vmem [resolvable:$true] %s2290_s5 }
0x1334   :  { %v2678_v33 = vpack.c.bf16 %v1718_v29, %v1717_v10  ;;  %p2985_p3 = scmp.lt.s32.totalorder %s2291_s5, %s2291_s5 }
0x1336   :  { %2679 = vmatprep.subr.bf16.mxu0 %v2678_v33 }
0x1337   :  { %2681 = vmatpush3.bf16.msra.mxu0 %v2678_v33 }
0x1338   :  { %2683 = vmatprep.subr.bf16.mxu0 %v3432_v9 }
0x133a   :  { %2552 = vmatmul.mubr.msk.f32.vlgmr.msra.gmra.mrb[16].mxu0 %vm305_vm1, %v3419_v41 }
0x133b   :  { %2685 = vmatpush3.bf16.msra.mxu0 %v3432_v9 }
0x133c   :  { %2687 = vmatprep.subr.bf16.mxu0 %v3437_v17 }
0x133f   :  { %2689 = vmatpush3.bf16.msra.mxu0 %v3437_v17 }
0x1340   :  { %2691 = vmatprep.subr.bf16.mxu0 %v3448_v43 }
0x1343   :  { %2693 = vmatpush3.bf16.msra.mxu0 %v3448_v43 }
0x1344   :  { %2695 = vmatprep.subr.bf16.mxu0 %v3458_v26 }
0x1347   :  { %2697 = vmatpush3.bf16.msra.mxu0 %v3458_v26 }
0x140d   :  { %v2553_v2 = vpop.f32.mrb[16].mxu0 }
0x140e   :  { %v1785_v3 = vpop.f32.mrb[17].mxu0  ;;  %v1797_v35 = vmul.f32 %v2553_v2, %v3463_v44  ;;  %v1795_v36 = vmul.f32 %v2553_v2, %v3471_v48  ;;  %v1033_v44 = vadd.f32 %v3351_v27, %v3267_v25  ;;  %v2338_v48 = vclamps-f32 %v2553_v2, 1e+14 }
0x140f   :  { %v1796_v41 = vmul.f32 %v1785_v3, %v3465_v30  ;;  %v1794_v9 = vmul.f32 %v1785_v3, %v3473_v49  ;;  %v2337_v49 = vclamps-f32 %v1785_v3, 1e+14 }
0x1410   :  { %1802 = vrot.lane.b32.xlu1 %v1797_v35, %s3014_s15  ;;  %2896 = vtanh.f32 %v1033_v44  ;;  %v1045_v16 = vsub.f32 0.0, %v1033_v44 }
0x1411   :  { %1800 = vrot.lane.b32.xlu0 %v1796_v41, %s3014_s15 }
0x1412   :  { %v1047_v19 = vmul.f32 1.442695, %v1045_v16 }
0x141a   :  { %v2897_v37 = vpop.eup %2896 }
0x1482   :  { %v1803_v17 = vpop.permute.xlu1 %1802 }
0x1483   :  { %v1801_v43 = vpop.permute.xlu0 %1800  ;;  %v1807_v26 = vsel %vm299_vm2, %v1795_v36, %v1803_v17 }
0x1484   :  { %v1806_v51 = vsel %vm299_vm2, %v1794_v9, %v1801_v43 }
0x1485   :  { %2570 = vmatprep.mubr.msk.f32.mxu0 %vm302_vm3, %v1806_v51 }
0x1486   :  { %2571 = vmatmul.mubr.msk.f32.vlgmr.msra.gmra.mrb[18].mxu0 %vm302_vm3, %v1807_v26 }
0x1559   :  { %v2572_v30 = vpop.f32.mrb[18].mxu0 }
0x155a   :  { %1893 = vrot.lane.b32.xlu1 %v2572_v30, %s3015_s21  ;;  %v1880_v50 = vpop.f32.mrb[19].mxu0 }
0x155b   :  { %1891 = vrot.lane.b32.xlu0 %v1880_v50, %s3015_s21 }
0x155e   :  { %1919 = vrot.lane.b32.xlu1 %v2338_v48, %s3014_s15 }
0x155f   :  { %1917 = vrot.lane.b32.xlu0 %v2337_v49, %s3014_s15 }
0x1562   :  { %1037 = vrot.lane.b32.xlu1 %v3351_v27, %s3014_s15  ;;  %v1034_v27 = vadd.f32 %v3349_v22, %v3263_v21 }
0x1566   :  { %1061 = vrot.lane.b32.xlu1 %v2897_v37, %s3013_s14  ;;  %v110_v37 = vld [vmem:[%s3687_s7 + $0x28] sm:$0xff] }
0x15cc   :  { %v1894_v25 = vpop.permute.xlu1 %1893 }
0x15cd   :  { %v1898_v38 = vadd.f32 %v2553_v2, %v1894_v25  ;;  %v1892_v63 = vpop.permute.xlu0 %1891  ;;  %v1096_v25 = vsub.f32 1.0, %v110_v37 }
0x15ce   :  { %v1897_v0 = vadd.f32 %v1892_v63, %v1785_v3 }
0x15cf   :  { %v1900_v1 = vsub.f32 0.0, %v1898_v38 }
0x15d0   :  { %v1899_v15 = vsub.f32 0.0, %v1897_v0  ;;  %v1920_v46 = vpop.permute.xlu1 %1919  ;;  %v116_v0 = vld [vmem:[%s3687_s7 + $0x58] sm:$0xff] }
0x15d1   :  { %v1903_v42 = vmul.f32 1.442695, %v1900_v1  ;;  %v1918_v59 = vpop.permute.xlu0 %1917  ;;  %v115_v1 = vld [vmem:[%s3687_s7 + $0x50] sm:$0xff] }
0x15d2   :  { %v1901_v20 = vmul.f32 1.442695, %v1899_v15  ;;  %v2079_v15 = vsub.f32 1.0, %v116_v0 }
0x15d3   :  { %2898 = vpow2.f32 %v1903_v42  ;;  %v2078_v42 = vsub.f32 1.0, %v115_v1 }
0x15d4   :  { %2900 = vpow2.f32 %v1901_v20  ;;  %v1038_v2 = vpop.permute.xlu1 %1037 }
0x15d8   :  { %v1062_v36 = vpop.permute.xlu1 %1061 }
0x15dd   :  { %v2899_v23 = vpop.eup %2898 }
0x15de   :  { %v2901_v24 = vpop.eup %2900  ;;  %v1906_v53 = vadd.f32 1.0, %v2899_v23 }
0x15df   :  { %v1905_v31 = vadd.f32 1.0, %v2901_v24 }
0x15e0   :  { %2902 = vrcp.f32 %v1906_v53 }
0x15e1   :  { %2904 = vrcp.f32 %v1905_v31 }
0x15e2   :  { %2906 = vtanh.f32 %v1034_v27 }
0x15ea   :  { %v2903_v45 = vpop.eup %2902 }
0x15eb   :  { %v2905_v56 = vpop.eup %2904  ;;  %v1924_v58 = vmul.f32 %v2903_v45, %v1920_v46 }
0x15ec   :  { %v1923_v32 = vmul.f32 %v2905_v56, %v1918_v59  ;;  %v2907_v21 = vpop.eup %2906 }
0x15ee   :  { %v2798_v34 = vpack.i.bf16 %v1924_v58, %v1923_v32 }
0x15f0   :  { %2799 = vrot.lane.b32.xlu0 %v2798_v34, %s3014_s15 }
0x15f4   :  { %1039 = vrot.lane.b32.xlu0 %v3349_v22, %s3014_s15  ;;  %v1046_v22 = vsub.f32 0.0, %v1034_v27 }
0x15f6   :  { %v1049_v18 = vmul.f32 1.442695, %v1046_v22 }
0x15f8   :  { %1063 = vrot.lane.b32.xlu0 %v2907_v21, %s3013_s14  ;;  %2908 = vpow2.f32 %v1049_v18 }
0x15f9   :  { %2910 = vpow2.f32 %v1047_v19 }
0x1602   :  { %v2909_v4 = vpop.eup %2908 }
0x1603   :  { %v2911_v5 = vpop.eup %2910  ;;  %v1052_v10 = vadd.f32 1.0, %v2909_v4 }
0x1604   :  { %v1051_v29 = vadd.f32 1.0, %v2911_v5 }
0x1605   :  { %2912 = vrcp.f32 %v1052_v10 }
0x1606   :  { %2914 = vrcp.f32 %v1051_v29 }
0x160f   :  { %v3595_v43 = vpop.eup %2912 }
0x1610   :  { %v3597_v51 = vpop.eup %2914 }
0x1611   :  { %v1067_v44 = vmul.f32 %v3597_v51, %v1062_v36 }
0x1662   :  { %v2800_v6 = vpop.permute.xlu0 %2799 }
0x1663   :  { %v2802_v60 = vunpack.i.h.bf16 %v2800_v6  ;;  %v2801_v61 = vunpack.i.l.bf16 %v2800_v6 }
0x1665   :  { %v1933_v8 = vsel %vm548_vm4, %v1880_v50, %v2801_v61  ;;  %v1934_v12 = vsel %vm548_vm4, %v2572_v30, %v2802_v60  ;;  %v1043_v30 = vadd.f32 %v1038_v2, %v3288_v7 }
0x1666   :  { %v2698_v13 = vpack.c.bf16 %v1934_v12, %v1933_v8  ;;  %v1040_v33 = vpop.permute.xlu0 %1039 }
0x1668   :  { %2699 = vmatprep.subr.bf16.mxu1 %v2698_v13 }
0x1669   :  { %2701 = vmatpush3.bf16.msra.mxu1 %v2698_v13 }
0x166a   :  { %v1064_v17 = vpop.permute.xlu0 %1063 }
0x166b   :  { %v1068_v26 = vmul.f32 %v3595_v43, %v1064_v17 }
0x166c   :  { %2578 = vmatmul.mubr.msk.f32.vlgmr.msra.gmra.mrb[6].mxu1 %vm305_vm1, %v104_v14 }
0x173f   :  { %v2579_v3 = vpop.f32.mrb[6].mxu1 }
0x1740   :  { %v2017_v35 = vadd.f32 %v2579_v3, %v3499_v55  ;;  %2022 = vrot.lane.b32.xlu0 %v2579_v3, %s3014_s15  ;;  %v2007_v41 = vpop.f32.mrb[7].mxu1  ;;  %v1044_v55 = vadd.f32 %v1040_v33, %v3286_v40  ;;  %v109_v40 = vld [vmem:[%s3687_s7 + $0x20] sm:$0xff]  ;;  %v2104_v33 = vld [vmem:[#allocation5] sm:$0xff] }
0x1741   :  { %v2016_v9 = vadd.f32 %v2007_v41, %v3503_v57  ;;  %2020 = vrot.lane.b32.xlu1 %v2007_v41, %s3014_s15  ;;  %v1069_v57 = vadd.f32 %v1067_v44, %v1043_v30  ;;  %v1095_v7 = vsub.f32 1.0, %v109_v40  ;;  %2584 = vmatprep.mubr.msk.f32.mxu1 %vm305_vm1, %v2104_v33 }
0x1742   :  { %2916 = vtanh.f32 %v2017_v35  ;;  %v1070_v50 = vadd.f32 %v1068_v26, %v1044_v55  ;;  %v2029_v20 = vsub.f32 0.0, %v2017_v35 }
0x1743   :  { %2918 = vtanh.f32 %v2016_v9  ;;  %v2028_v23 = vsub.f32 0.0, %v2016_v9 }
0x1744   :  { %2920 = vtanh.f32 %v1070_v50  ;;  %v2032_v24 = vmul.f32 1.442695, %v2029_v20 }
0x1745   :  { %2922 = vtanh.f32 %v1069_v57  ;;  %v2030_v53 = vmul.f32 1.442695, %v2028_v23  ;;  %v2191_v23 = vld [vmem:[%s3689_s9 + $0x20] sm:$0xff] }
0x1746   :  { %2924 = vpow2.f32 %v2032_v24  ;;  %v2192_v24 = vld [vmem:[%s3689_s9 + $0x28] sm:$0xff] }
0x1747   :  { %2926 = vpow2.f32 %v2030_v53  ;;  %v2714_v53 = vpack.c.bf16 %v2192_v24, %v2191_v23 }
0x174c   :  { %v2917_v48 = vpop.eup %2916 }
0x174d   :  { %v2919_v49 = vpop.eup %2918  ;;  %2046 = vrot.lane.b32.xlu0 %v2917_v48, %s3013_s14 }
0x174e   :  { %2044 = vrot.lane.b32.xlu1 %v2919_v49, %s3013_s14  ;;  %v2921_v38 = vpop.eup %2920 }
0x174f   :  { %v2923_v63 = vpop.eup %2922 }
0x1750   :  { %v2925_v31 = vpop.eup %2924 }
0x1751   :  { %1090 = vperm.xlu0 %2732, %v110_v37   ;;  %v2927_v27 = vpop.eup %2926  ;;  %v2035_v45 = vadd.f32 1.0, %v2925_v31  ;;  %v2193_v31 = vld [vmem:[%s3689_s9 + $0x30] sm:$0xff] }
0x1752   :  { %1085 = vperm.xlu1 %2731, %v109_v40   ;;  %v2034_v46 = vadd.f32 1.0, %v2927_v27  ;;  %v2194_v27 = vld [vmem:[%s3689_s9 + $0x38] sm:$0xff] }
0x1753   :  { %2928 = vrcp.f32 %v2035_v45  ;;  %v2718_v45 = vpack.c.bf16 %v2194_v27, %v2193_v31 }
0x1754   :  { %2930 = vrcp.f32 %v2034_v46 }
0x1755   :  { %1104 = vperm.xlu0 %2732, %v1096_v25  }
0x1756   :  { %1099 = vperm.xlu1 %2731, %v1095_v7   ;;  %v2187_v7 = vld [vmem:[%s3689_s9] sm:$0xff] }
0x1759   :  { %1077 = vrot.lane.b32.xlu0 %v2921_v38, %s3014_s15  ;;  %v2188_v38 = vld [vmem:[%s3689_s9 + $0x8] sm:$0xff] }
0x175a   :  { %1075 = vrot.lane.b32.xlu1 %v2923_v63, %s3014_s15 }
0x175d   :  { %2073 = vperm.xlu0 %2732, %v116_v0   ;;  %v2929_v58 = vpop.eup %2928 }
0x175e   :  { %2068 = vperm.xlu1 %2731, %v115_v1   ;;  %v2931_v32 = vpop.eup %2930  ;;  %v2706_v1 = vpack.c.bf16 %v2188_v38, %v2187_v7 }
0x1761   :  { %2087 = vperm.xlu0 %2732, %v2079_v15   ;;  %v2190_v15 = vld [vmem:[%s3689_s9 + $0x18] sm:$0xff] }
0x1762   :  { %2082 = vperm.xlu1 %2731, %v2078_v42   ;;  %v2105_v42 = vld [vmem:[#allocation5 + $0x8] sm:$0xff] }
0x17b2   :  { %v2023_v52 = vpop.permute.xlu0 %2022 }
0x17b3   :  { %v2021_v56 = vpop.permute.xlu1 %2020  ;;  %v2027_v34 = vadd.f32 %v2023_v52, %v3522_v54 }
0x17b4   :  { %v2026_v60 = vadd.f32 %v2021_v56, %v3524_v47  ;;  %v2343_v56 = vld [vmem:[%s3690_s10] ss:$0 sm:$0xff] }
0x17bf   :  { %v2047_v59 = vpop.permute.xlu0 %2046 }
0x17c0   :  { %v2051_v21 = vmul.f32 %v2929_v58, %v2047_v59  ;;  %v2045_v6 = vpop.permute.xlu1 %2044 }
0x17c1   :  { %v2050_v61 = vmul.f32 %v2931_v32, %v2045_v6 }
0x17c2   :  { %v2053_v8 = vadd.f32 %v2051_v21, %v2027_v34 }
0x17c3   :  { %v2052_v12 = vadd.f32 %v2050_v61, %v2026_v60 }
0x17c4   :  { %2932 = vtanh.f32 %v2053_v8 }
0x17c5   :  { %2934 = vtanh.f32 %v2052_v12 }
0x17ce   :  { %v2933_v13 = vpop.eup %2932 }
0x17cf   :  { %v2935_v14 = vpop.eup %2934  ;;  %2060 = vrot.lane.b32.xlu0 %v2933_v13, %s3014_s15 }
0x17d0   :  { %v1091_v22 = vpop.permute.xlu0 %1090  ;;  %2058 = vrot.lane.b32.xlu1 %v2935_v14, %s3014_s15 }
0x17d1   :  { %v1086_v16 = vpop.permute.xlu1 %1085 }
0x17d4   :  { %v1105_v18 = vpop.permute.xlu0 %1104 }
0x17d5   :  { %v1100_v19 = vpop.permute.xlu1 %1099  ;;  %v1108_v10 = vmul.f32 %v1105_v18, %v3295_v28 }
0x17d6   :  { %v1107_v2 = vmul.f32 %v1100_v19, %v3297_v11 }
0x17d8   :  { %v1078_v54 = vpop.permute.xlu0 %1077 }
0x17d9   :  { %v1082_v4 = vmul.f32 %v3595_v43, %v1078_v54  ;;  %v1076_v5 = vpop.permute.xlu1 %1075 }
0x17da   :  { %v1081_v47 = vmul.f32 %v3597_v51, %v1076_v5 }
0x17db   :  { %v1094_v29 = vmul.f32 %v1091_v22, %v1082_v4 }
0x17dc   :  { %v1093_v3 = vmul.f32 %v1086_v16, %v1081_v47  ;;  %v2074_v17 = vpop.permute.xlu0 %2073 }
0x17dd   :  { %v1110_v35 = vadd.f32 %v1108_v10, %v1094_v29  ;;  %v2069_v36 = vpop.permute.xlu1 %2068 }
0x17de   :  { %v1109_v41 = vadd.f32 %v1107_v2, %v1093_v3 }
0x17e0   :  { %v2803_v9 = vpack.i.bf16 %v1110_v35, %v1109_v41  ;;  %v2088_v43 = vpop.permute.xlu0 %2087 }
0x17e1   :  { %v2083_v26 = vpop.permute.xlu1 %2082  ;;  %v2091_v11 = vmul.f32 %v2088_v43, %v3531_v62 }
0x17e2   :  { %2804 = vrot.lane.b32.xlu1 %v2803_v9, %s3015_s21  ;;  %v2090_v57 = vmul.f32 %v2083_v26, %v3533_v39  ;;  %v2189_v39 = vld [vmem:[%s3689_s9 + $0x10] sm:$0xff]  ;;  %s2980_s9 = scalar_lea.vmem %s2291_s5, 256 }
0x17e3   :  { %v2710_v20 = vpack.c.bf16 %v2190_v15, %v2189_v39  ;;  %p2981_p2 = scmp.ne.s32.totalorder %s2291_s5, %s2980_s9  ;;  %p2986_p4 = scmp.lt.s32.totalorder %s2980_s9, %s2980_s9 }
0x17e5   :  { %p2987_p5 = por %p2986_p4, %p2985_p3 }
0x17e7   :  { %p2988_p6 = pnand %p2987_p5, %p2981_p2 }
0x1841   :  { %v2061_v44 = vpop.permute.xlu0 %2060 }
0x1842   :  { %v2059_v51 = vpop.permute.xlu1 %2058  ;;  %v2065_v55 = vmul.f32 %v2929_v58, %v2061_v44 }
0x1843   :  { %v2064_v28 = vmul.f32 %v2931_v32, %v2059_v51 }
0x1844   :  { %v2077_v30 = vmul.f32 %v2074_v17, %v2065_v55 }
0x1845   :  { %v2076_v50 = vmul.f32 %v2069_v36, %v2064_v28 }
0x1846   :  { %v2093_v49 = vadd.f32 %v2091_v11, %v2077_v30 }
0x1847   :  { %v2092_v37 = vadd.f32 %v2090_v57, %v2076_v50 }
0x1854   :  { %v2805_v48 = vpop.permute.xlu1 %2804 }
0x1855   :  { %v2807_v40 = vunpack.i.h.bf16 %v2805_v48  ;;  %v2806_v25 = vunpack.i.l.bf16 %v2805_v48 }
0x1857   :  { %v2102_v63 = vsel %vm299_vm2, %v2806_v25, %v2092_v37  ;;  %v2103_v0 = vsel %vm299_vm2, %v2807_v40, %v2093_v49 }
0x1858   :  { %v2702_v62 = vpack.c.bf16 %v2103_v0, %v2102_v63 }
0x185a   :  { %2703 = vmatprep.subr.bf16.mxu1 %v2702_v62 }
0x185b   :  { %2705 = vmatpush3.bf16.msra.mxu1 %v2702_v62 }
0x185c   :  { %2707 = vmatprep.subr.bf16.mxu1 %v2706_v1 }
0x185e   :  { %2585 = vmatmul.mubr.msk.f32.vlgmr.msra.gmra.mrb[8].mxu1 %vm305_vm1, %v2105_v42 }
0x185f   :  { %2709 = vmatpush3.bf16.msra.mxu1 %v2706_v1 }
0x1860   :  { %2711 = vmatprep.subr.bf16.mxu1 %v2710_v20 }
0x1863   :  { %2713 = vmatpush3.bf16.msra.mxu1 %v2710_v20 }
0x1864   :  { %2715 = vmatprep.subr.bf16.mxu1 %v2714_v53 }
0x1867   :  { %2717 = vmatpush3.bf16.msra.mxu1 %v2714_v53 }
0x1868   :  { %2719 = vmatprep.subr.bf16.mxu1 %v2718_v45 }
0x186b   :  { %2721 = vmatpush3.bf16.msra.mxu1 %v2718_v45 }
0x1931   :  { %v2586_v46 = vpop.f32.mrb[8].mxu1 }
0x1932   :  { %v2178_v52 = vpop.f32.mrb[9].mxu1 }
0x1933   :  { %2603 = vmatprep.mubr.msk.f32.mxu1 %vm302_vm3, %v2178_v52 }
0x1934   :  { %2604 = vmatmul.mubr.msk.f32.vlgmr.msra.gmra.mrb[10].mxu1 %vm302_vm3, %v2586_v46 }
0x1a07   :  { %v2605_v58 = vpop.f32.mrb[10].mxu1 }
0x1a08   :  { %v2280_v59 = vadd.f32 %v2605_v58, %v2343_v56  ;;  %v2274_v32 = vpop.f32.mrb[11].mxu1 }
0x1a09   :  { %v2275_v34 = vadd.f32 %v2343_v56, %v2274_v32 }
0x1a0a   :  { %2284 = vst.msk [vmem:[#allocation7 + $0x8] sm:$0xff] %vm305_vm1, %v2280_v59 }
0x1a0b   :  { %2283 = vst.msk [vmem:[#allocation7] sm:$0xff] %vm305_vm1, %v2275_v34 }
0x1a0c   :  { %2991 = shalt.err (!%p2988_p6)
}
0x1a0d   :  { %s2992_s1 = scalar_lea.hbm %s3691_s11, 256 }
0x1a0e   :  { %p2993_p7 = scmp.ne.s32.totalorder %s3691_s11, %s2992_s1  ;;  %p2996_p8 = scmp.lt.u32.totalorder %s2992_s1, %s3691_s11 }
0x1a10   :  { %p2998_p9 = pnand %p2996_p8, %p2993_p7 }
0x1a12   :  { %3001 = shalt.err (!%p2998_p9)
}
0x1a13   :  { %2296 = dma.vmem_to_hbm [thread:$0]  %s2291_s5, 256, %s3691_s11, [#allocation4], %s3009_s27, %s3009_s27, %s3010_s28  }
0x1a14   :  { %3006 = dma.done.wait [#allocation4], 256  }
0x1a15   :  { %3007 = vsyncadd [#allocation4], 4294967040 }
0x1a16   :  { %2300 = vsyncpa [#allocation3], 1 }
0x1a17   :  { %2301 = vsyncpa [#allocation6], 1 }
0x1a18   :  { %2302 = vsyncpa [#allocation4], 1 }

</bundles_post_ra>
